<compile_context>
chip_gen: v7x
topology: tpu7x:2x2x1
jax: 0.10.0
libtpu: 0.0.40
codegen_flags: <defaults>
</compile_context>

<pallas_src>
import jax
import jax.numpy as jnp
from jax.experimental import pallas as pl
from jax.experimental.pallas import tpu as pltpu


# ----------------------------------------------------------------------------
# Stacked transformer kernel: grid = (batch_tiles, L).
# One program = one batch tile (Bt prompts) x one ResidualAttentionBlock.
# The output block (index constant along L) is the resident activation.
# ----------------------------------------------------------------------------
def _make_stack_kernel(Bt, S, D, H):
    Dh = D // H
    scale = 1.0 / (Dh ** 0.5)
    bf16 = jnp.bfloat16
    f32 = jnp.float32

    def kernel(prompts_ref, pos_ref, mask_ref,
               g1_ref, b1_ref, wqkv_ref, bqkv_ref, wo_ref, bo_ref,
               g2_ref, b2_ref, wfc_ref, bfc_ref, wpr_ref, bpr_ref, o_ref):
        l = pl.program_id(1)

        # Layer 0 prologue: x = half(prompts) + half(positional_embedding) -> f32
        @pl.when(l == 0)
        def _():
            xh = prompts_ref[...].astype(bf16) + pos_ref[...].astype(bf16)[None]
            o_ref[...] = xh.astype(f32)

        x = o_ref[...].reshape(Bt * S, D)          # resident activation, f32

        def ln(v, g, b):
            mu = jnp.mean(v, axis=-1, keepdims=True)
            var = jnp.mean((v - mu) ** 2, axis=-1, keepdims=True)
            return (v - mu) * jax.lax.rsqrt(var + 1e-5) * g + b

        # --- multi-head self-attention (causal mask), fused QKV projection ---
        xn = ln(x, g1_ref[0], b1_ref[0])
        qkv = jnp.dot(xn.astype(bf16), wqkv_ref[0],
                      preferred_element_type=f32) + bqkv_ref[0]      # (Bt*S, 3D)
        q = ((qkv[:, :D] * scale).astype(bf16)).reshape(Bt, S, D)
        k = qkv[:, D:2 * D].astype(bf16).reshape(Bt, S, D)
        v = qkv[:, 2 * D:].astype(bf16).reshape(Bt, S, D)

        mask_b = jnp.broadcast_to(mask_ref[...], (Bt, S, S))         # hoisted

        heads = []
        for h in range(H):                         # heads unrolled, batched over Bt
            sl = slice(h * Dh, (h + 1) * Dh)
            s = jnp.einsum("bqd,bkd->bqk", q[..., sl], k[..., sl],
                           preferred_element_type=f32)
            s = s + mask_b
            s = s - jnp.max(s, axis=-1, keepdims=True)
            e = jnp.exp(s)
            p = e * pl.reciprocal(jnp.sum(e, axis=-1, keepdims=True), approx=True)
            heads.append(jnp.einsum("bqk,bkd->bqd", p.astype(bf16), v[..., sl],
                                    preferred_element_type=f32))
        att = jnp.concatenate(heads, axis=-1).reshape(Bt * S, D)
        att = jnp.dot(att.astype(bf16), wo_ref[0],
                      preferred_element_type=f32) + bo_ref[0]
        x = x + att

        # --- MLP with QuickGELU (x * sigmoid(1.702 x)) ---
        xn2 = ln(x, g2_ref[0], b2_ref[0])
        hdn = jnp.dot(xn2.astype(bf16), wfc_ref[0],
                      preferred_element_type=f32) + bfc_ref[0]
        hdn = hdn * jax.nn.sigmoid(1.702 * hdn)
        mlp = jnp.dot(hdn.astype(bf16), wpr_ref[0],
                      preferred_element_type=f32) + bpr_ref[0]

        o_ref[...] = (x + mlp).reshape(Bt, S, D)

    return kernel


def _pick_block_b(B, max_bt):
    bt = min(B, max_bt)
    while B % bt:
        bt -= 1
    return bt


def transformer_stack(prompts, pos, mask, params, num_heads, max_block_b=8):
    B, S, D = prompts.shape
    L = params["wqkv"].shape[0]
    Bt = _pick_block_b(B, max_block_b)
    names = ("g1", "b1", "wqkv", "bqkv", "wo", "bo",
             "g2", "b2", "wfc", "bfc", "wpr", "bpr")
    in_specs = [
        pl.BlockSpec((Bt, S, D), lambda b, l: (b, 0, 0)),   # prompts (read at l==0)
        pl.BlockSpec((S, D), lambda b, l: (0, 0)),          # positional embedding
        pl.BlockSpec((S, S), lambda b, l: (0, 0)),          # causal mask
    ]
    for n in names:                                         # layer-l params
        a = params[n]
        in_specs.append(pl.BlockSpec((1,) + a.shape[1:], lambda b, l: (l, 0, 0)))
    return pl.pallas_call(
        _make_stack_kernel(Bt, S, D, num_heads),
        out_shape=jax.ShapeDtypeStruct((B, S, D), jnp.float32),
        grid=(B // Bt, L),
        in_specs=in_specs,
        out_specs=pl.BlockSpec((Bt, S, D), lambda b, l: (b, 0, 0)),  # resident over l
        compiler_params=pltpu.CompilerParams(
            dimension_semantics=("parallel", "arbitrary"),
            vmem_limit_bytes=48 * 1024 * 1024),
    )(prompts, pos, mask, *(params[n] for n in names))


# ----------------------------------------------------------------------------
# Head kernel: ln_final on the EOT token row + @ text_projection (bf16 output).
# Only the 8-row-aligned block holding the EOT row is DMA'd (scalar prefetch
# drives the block index); the row offset within the block is resolved in-kernel.
# ----------------------------------------------------------------------------
_HEAD_ROWS = 8


def _head_kernel(eot_ref, x_ref, g_ref, b_ref, proj_ref, o_ref):
    b = pl.program_id(0)
    r = eot_ref[b] % _HEAD_ROWS
    # transformer(...).half() then .float(): only the EOT row feeds the output,
    # so the bf16 round-trip is applied to just that row.
    row = x_ref[0, pl.ds(r, 1), :].astype(jnp.bfloat16).astype(jnp.float32)  # (1, D)
    mu = jnp.mean(row, axis=-1, keepdims=True)
    var = jnp.mean((row - mu) ** 2, axis=-1, keepdims=True)
    xn = (row - mu) * jax.lax.rsqrt(var + 1e-5) * g_ref[...] + b_ref[...]
    out = jnp.dot(xn.astype(jnp.bfloat16), proj_ref[...],
                  preferred_element_type=jnp.float32)
    o_ref[0] = out.astype(jnp.bfloat16)


def ln_final_project(x, eot_idx, gamma, beta, proj):
    B, S, D = x.shape
    P = proj.shape[1]
    grid_spec = pltpu.PrefetchScalarGridSpec(
        num_scalar_prefetch=1,
        grid=(B,),
        in_specs=[
            # only the 8-row block containing the EOT token, not the whole prompt
            pl.BlockSpec((1, _HEAD_ROWS, D), lambda b, eot: (b, eot[b] // _HEAD_ROWS, 0)),
            pl.BlockSpec((1, D), lambda b, eot: (0, 0)),
            pl.BlockSpec((1, D), lambda b, eot: (0, 0)),
            pl.BlockSpec((D, P), lambda b, eot: (0, 0)),
        ],
        out_specs=pl.BlockSpec((1, 1, P), lambda b, eot: (b, 0, 0)),
    )
    out = pl.pallas_call(
        _head_kernel,
        out_shape=jax.ShapeDtypeStruct((B, 1, P), jnp.bfloat16),
        grid_spec=grid_spec,
        compiler_params=pltpu.CompilerParams(dimension_semantics=("parallel",)),
    )(eot_idx, x, gamma, beta, proj)
    return out[:, 0, :]


# ----------------------------------------------------------------------------
# Full TextEncoder forward
# ----------------------------------------------------------------------------
def text_encoder(prompts, tokenized_prompts, params, num_heads, max_block_b=8):
    B, S, D = prompts.shape
    # Pad sequence length to a multiple of 8 so (S, D)/(S, S) tiles are
    # sublane-aligned (e.g. CLIP's 77 -> 80).  Pad keys are masked by the causal
    # mask (-1e9) and pad query rows are never read by the head kernel.
    S_pad = ((S + 7) // 8) * 8
    pos, mask = params["pos"], params["mask"]
    if S_pad != S:
        prompts = jnp.pad(prompts, ((0, 0), (0, S_pad - S), (0, 0)))
        pos = jnp.pad(pos, ((0, S_pad - S), (0, 0)))
        mask = jnp.pad(mask, ((0, S_pad - S), (0, S_pad - S)), constant_values=-1e9)

    # x.permute(1, 0, 2) in torch is a layout-only change; we stay (B, S, D).
    x = transformer_stack(prompts, pos, mask, params, num_heads, max_block_b)
    eot_idx = jnp.argmax(tokenized_prompts, axis=-1).astype(jnp.int32)
    return ln_final_project(x, eot_idx, params["ln_f_g"], params["ln_f_b"],
                            params["proj"])


# ----------------------------------------------------------------------------
# Deterministic synthetic parameters (shapes implied by CLIP text transformer).
# Layer params are stacked along a leading L axis; weight matrices are stored
# pre-transposed as (in, out) in bf16 so kernels do bf16 x @ W with f32 accum.
# ----------------------------------------------------------------------------
def init_params(key, S, D, H, L, P):
    k_pos, k_qkv, k_o, k_fc, k_pr, k_proj = jax.random.split(key, 6)

    def nrm(k, shape, scale=0.02):
        return (scale * jax.random.normal(k, shape)).astype(jnp.float32)

    return {
        "pos": nrm(k_pos, (S, D)),                                    # positional_embedding
        "mask": jnp.triu(jnp.full((S, S), -1e9, jnp.float32), k=1),   # causal mask
        "ln_f_g": jnp.ones((1, D), jnp.float32),                      # ln_final.weight
        "ln_f_b": jnp.zeros((1, D), jnp.float32),                     # ln_final.bias
        "proj": nrm(k_proj, (D, P)).astype(jnp.bfloat16),             # text_projection
        "g1": jnp.ones((L, 1, D), jnp.float32),
        "b1": jnp.zeros((L, 1, D), jnp.float32),
        "wqkv": nrm(k_qkv, (L, D, 3 * D)).astype(jnp.bfloat16),       # fused Q/K/V
        "bqkv": jnp.zeros((L, 1, 3 * D), jnp.float32),
        "wo": nrm(k_o, (L, D, D)).astype(jnp.bfloat16),
        "bo": jnp.zeros((L, 1, D), jnp.float32),
        "g2": jnp.ones((L, 1, D), jnp.float32),
        "b2": jnp.zeros((L, 1, D), jnp.float32),
        "wfc": nrm(k_fc, (L, D, 4 * D)).astype(jnp.bfloat16),
        "bfc": jnp.zeros((L, 1, 4 * D), jnp.float32),
        "wpr": nrm(k_pr, (L, 4 * D, D)).astype(jnp.bfloat16),
        "bpr": jnp.zeros((L, 1, D), jnp.float32),
    }


if __name__ == "__main__":
    B, S, D, H, L, P = 2, 8, 32, 4, 2, 16   # n_cls, ctx_len, width, heads, layers, embed_dim

    key = jax.random.PRNGKey(0)
    kp, kt, kw = jax.random.split(key, 3)
    params = init_params(kw, S, D, H, L, P)

    prompts = jax.random.normal(kp, (B, S, D), dtype=jnp.float32)      # learned prompts
    tokenized_prompts = jax.random.randint(kt, (B, S), 0, 1000).astype(jnp.int32)

    out = text_encoder(prompts, tokenized_prompts, params, H)
    out = jax.block_until_ready(out)
    assert out.shape == (B, P) and out.dtype == jnp.bfloat16
    print("KERNEL_OK")
</pallas_src>

<mosaic_0001>
module attributes {stable_mosaic.version = 11 : i64} {
  func.func @kernel(%arg0: i32, %arg1: i32, %arg2: memref<2x8x32xf32, #tpu.memory_space<vmem>>, %arg3: memref<8x32xf32, #tpu.memory_space<vmem>>, %arg4: memref<8x8xf32, #tpu.memory_space<vmem>>, %arg5: memref<1x1x32xf32, #tpu.memory_space<vmem>>, %arg6: memref<1x1x32xf32, #tpu.memory_space<vmem>>, %arg7: memref<1x32x96xbf16, #tpu.memory_space<vmem>>, %arg8: memref<1x1x96xf32, #tpu.memory_space<vmem>>, %arg9: memref<1x32x32xbf16, #tpu.memory_space<vmem>>, %arg10: memref<1x1x32xf32, #tpu.memory_space<vmem>>, %arg11: memref<1x1x32xf32, #tpu.memory_space<vmem>>, %arg12: memref<1x1x32xf32, #tpu.memory_space<vmem>>, %arg13: memref<1x32x128xbf16, #tpu.memory_space<vmem>>, %arg14: memref<1x1x128xf32, #tpu.memory_space<vmem>>, %arg15: memref<1x128x32xbf16, #tpu.memory_space<vmem>>, %arg16: memref<1x1x32xf32, #tpu.memory_space<vmem>>, %arg17: memref<2x8x32xf32, #tpu.memory_space<vmem>>) attributes {dimension_semantics = [#tpu.dimension_semantics<parallel>, #tpu.dimension_semantics<arbitrary>], iteration_bounds = array<i64: 1, 2>, scalar_prefetch = 0 : i64, scratch_operands = 0 : i64, tpu.core_type = #tpu.core_type<tc>, window_params = [{transform_indices = @transform_0, window_bounds = array<i64: 2, 8, 32>}, {pipeline_mode = #tpu.pipeline_mode<synchronous>, transform_indices = @transform_1, window_bounds = array<i64: 8, 32>}, {pipeline_mode = #tpu.pipeline_mode<synchronous>, transform_indices = @transform_2, window_bounds = array<i64: 8, 8>}, {transform_indices = @transform_3, window_bounds = array<i64: 1, 1, 32>}, {transform_indices = @transform_4, window_bounds = array<i64: 1, 1, 32>}, {transform_indices = @transform_5, window_bounds = array<i64: 1, 32, 96>}, {transform_indices = @transform_6, window_bounds = array<i64: 1, 1, 96>}, {transform_indices = @transform_7, window_bounds = array<i64: 1, 32, 32>}, {transform_indices = @transform_8, window_bounds = array<i64: 1, 1, 32>}, {transform_indices = @transform_9, window_bounds = array<i64: 1, 1, 32>}, {transform_indices = @transform_10, window_bounds = array<i64: 1, 1, 32>}, {transform_indices = @transform_11, window_bounds = array<i64: 1, 32, 128>}, {transform_indices = @transform_12, window_bounds = array<i64: 1, 1, 128>}, {transform_indices = @transform_13, window_bounds = array<i64: 1, 128, 32>}, {transform_indices = @transform_14, window_bounds = array<i64: 1, 1, 32>}, {transform_indices = @transform_15, window_bounds = array<i64: 2, 8, 32>}]} {
    %c0_i32 = arith.constant 0 : i32
    %0 = arith.cmpi eq, %arg1, %c0_i32 : i32
    %1 = arith.extui %0 : i1 to i32
    %c0_i32_0 = arith.constant 0 : i32
    %2 = arith.cmpi ne, %1, %c0_i32_0 : i32
    scf.if %2 {
      %c0_76 = arith.constant 0 : index
      %c0_77 = arith.constant 0 : index
      %c0_78 = arith.constant 0 : index
      %185 = vector.load %arg2[%c0_76, %c0_77, %c0_78] : memref<2x8x32xf32, #tpu.memory_space<vmem>>, vector<2x8x32xf32>
      %186 = arith.truncf %185 : vector<2x8x32xf32> to vector<2x8x32xbf16>
      %c0_79 = arith.constant 0 : index
      %c0_80 = arith.constant 0 : index
      %187 = vector.load %arg3[%c0_79, %c0_80] : memref<8x32xf32, #tpu.memory_space<vmem>>, vector<8x32xf32>
      %188 = arith.truncf %187 : vector<8x32xf32> to vector<8x32xbf16>
      %189 = vector.shape_cast %188 : vector<8x32xbf16> to vector<1x8x32xbf16>
      %190 = vector.broadcast %189 : vector<1x8x32xbf16> to vector<2x8x32xbf16>
      %191 = arith.addf %186, %190 : vector<2x8x32xbf16>
      %192 = arith.extf %191 : vector<2x8x32xbf16> to vector<2x8x32xf32>
      %c0_81 = arith.constant 0 : index
      %c0_82 = arith.constant 0 : index
      %c0_83 = arith.constant 0 : index
      %193 = vector.load %arg17[%c0_81, %c0_82, %c0_83] : memref<2x8x32xf32, #tpu.memory_space<vmem>>, vector<2x8x32xf32>
      tpu.vector_store %arg17[%c0_81, %c0_82, %c0_83], %192 {strides = array<i32>} : memref<2x8x32xf32, #tpu.memory_space<vmem>>, vector<2x8x32xf32>,
    } else {
    }
    %c0 = arith.constant 0 : index
    %c0_1 = arith.constant 0 : index
    %c0_2 = arith.constant 0 : index
    %3 = vector.load %arg17[%c0, %c0_1, %c0_2] : memref<2x8x32xf32, #tpu.memory_space<vmem>>, vector<2x8x32xf32>
    %4 = vector.shape_cast %3 : vector<2x8x32xf32> to vector<16x32xf32>
    %c0_3 = arith.constant 0 : index
    %c0_4 = arith.constant 0 : index
    %c0_5 = arith.constant 0 : index
    %5 = vector.load %arg5[%c0_3, %c0_4, %c0_5] : memref<1x1x32xf32, #tpu.memory_space<vmem>>, vector<1x1x32xf32>
    %6 = vector.shape_cast %5 : vector<1x1x32xf32> to vector<1x32xf32>
    %c0_6 = arith.constant 0 : index
    %c0_7 = arith.constant 0 : index
    %c0_8 = arith.constant 0 : index
    %7 = vector.load %arg6[%c0_6, %c0_7, %c0_8] : memref<1x1x32xf32, #tpu.memory_space<vmem>>, vector<1x1x32xf32>
    %8 = vector.shape_cast %7 : vector<1x1x32xf32> to vector<1x32xf32>
    %cst = arith.constant dense<0.000000e+00> : vector<16xf32>
    %9 = vector.multi_reduction <add>, %4, %cst [1] : vector<16x32xf32> to vector<16xf32>
    %10 = vector.shape_cast %9 : vector<16xf32> to vector<16x1xf32>
    %cst_9 = arith.constant 3.200000e+01 : f32
    %11 = vector.broadcast %cst_9 : f32 to vector<16x1xf32>
    %12 = arith.divf %10, %11 : vector<16x1xf32>
    %13 = vector.broadcast %12 : vector<16x1xf32> to vector<16x32xf32>
    %14 = arith.subf %4, %13 : vector<16x32xf32>
    %15 = arith.mulf %14, %14 : vector<16x32xf32>
    %cst_10 = arith.constant dense<0.000000e+00> : vector<16xf32>
    %16 = vector.multi_reduction <add>, %15, %cst_10 [1] : vector<16x32xf32> to vector<16xf32>
    %17 = vector.shape_cast %16 : vector<16xf32> to vector<16x1xf32>
    %cst_11 = arith.constant 3.200000e+01 : f32
    %18 = vector.broadcast %cst_11 : f32 to vector<16x1xf32>
    %19 = arith.divf %17, %18 : vector<16x1xf32>
    %20 = vector.broadcast %12 : vector<16x1xf32> to vector<16x32xf32>
    %21 = arith.subf %4, %20 : vector<16x32xf32>
    %cst_12 = arith.constant 9.99999974E-6 : f32
    %22 = vector.broadcast %cst_12 : f32 to vector<16x1xf32>
    %23 = arith.addf %19, %22 : vector<16x1xf32>
    %24 = math.rsqrt %23 : vector<16x1xf32>
    %25 = vector.broadcast %24 : vector<16x1xf32> to vector<16x32xf32>
    %26 = arith.mulf %21, %25 : vector<16x32xf32>
    %27 = vector.broadcast %6 : vector<1x32xf32> to vector<16x32xf32>
    %28 = arith.mulf %26, %27 : vector<16x32xf32>
    %29 = vector.broadcast %8 : vector<1x32xf32> to vector<16x32xf32>
    %30 = arith.addf %28, %29 : vector<16x32xf32>
    %31 = arith.truncf %30 : vector<16x32xf32> to vector<16x32xbf16>
    %c0_13 = arith.constant 0 : index
    %c0_14 = arith.constant 0 : index
    %c0_15 = arith.constant 0 : index
    %32 = vector.load %arg7[%c0_13, %c0_14, %c0_15] : memref<1x32x96xbf16, #tpu.memory_space<vmem>>, vector<1x32x96xbf16>
    %33 = vector.shape_cast %32 : vector<1x32x96xbf16> to vector<32x96xbf16>
    %cst_16 = arith.constant dense<0.000000e+00> : vector<16x96xf32>
    %34 = tpu.matmul %31, %33, %cst_16 {dimension_numbers = #tpu.dot_dimension_numbers<[1], [0], [0], [1], [0, 0, 1, 1], [], []>} : vector<16x32xbf16>, vector<32x96xbf16>, vector<16x96xf32> -> vector<16x96xf32>
    %c0_17 = arith.constant 0 : index
    %c0_18 = arith.constant 0 : index
    %c0_19 = arith.constant 0 : index
    %35 = vector.load %arg8[%c0_17, %c0_18, %c0_19] : memref<1x1x96xf32, #tpu.memory_space<vmem>>, vector<1x1x96xf32>
    %36 = vector.shape_cast %35 : vector<1x1x96xf32> to vector<1x96xf32>
    %37 = vector.broadcast %36 : vector<1x96xf32> to vector<16x96xf32>
    %38 = arith.addf %34, %37 : vector<16x96xf32>
    %39 = vector.extract_strided_slice %38 {offsets = [0, 0], sizes = [16, 32], strides = [1, 1]} : vector<16x96xf32> to vector<16x32xf32>
    %cst_20 = arith.constant 0.353553385 : f32
    %40 = vector.broadcast %cst_20 : f32 to vector<16x32xf32>
    %41 = arith.mulf %39, %40 : vector<16x32xf32>
    %42 = arith.truncf %41 : vector<16x32xf32> to vector<16x32xbf16>
    %43 = vector.shape_cast %42 : vector<16x32xbf16> to vector<2x8x32xbf16>
    %44 = vector.extract_strided_slice %38 {offsets = [0, 32], sizes = [16, 32], strides = [1, 1]} : vector<16x96xf32> to vector<16x32xf32>
    %45 = arith.truncf %44 : vector<16x32xf32> to vector<16x32xbf16>
    %46 = vector.shape_cast %45 : vector<16x32xbf16> to vector<2x8x32xbf16>
    %47 = vector.extract_strided_slice %38 {offsets = [0, 64], sizes = [16, 32], strides = [1, 1]} : vector<16x96xf32> to vector<16x32xf32>
    %48 = arith.truncf %47 : vector<16x32xf32> to vector<16x32xbf16>
    %49 = vector.shape_cast %48 : vector<16x32xbf16> to vector<2x8x32xbf16>
    %c0_21 = arith.constant 0 : index
    %c0_22 = arith.constant 0 : index
    %50 = vector.load %arg4[%c0_21, %c0_22] : memref<8x8xf32, #tpu.memory_space<vmem>>, vector<8x8xf32>
    %51 = vector.shape_cast %50 : vector<8x8xf32> to vector<1x8x8xf32>
    %52 = vector.broadcast %51 : vector<1x8x8xf32> to vector<2x8x8xf32>
    %53 = vector.extract_strided_slice %43 {offsets = [0, 0, 0], sizes = [2, 8, 8], strides = [1, 1, 1]} : vector<2x8x32xbf16> to vector<2x8x8xbf16>
    %54 = vector.extract_strided_slice %46 {offsets = [0, 0, 0], sizes = [2, 8, 8], strides = [1, 1, 1]} : vector<2x8x32xbf16> to vector<2x8x8xbf16>
    "tpu.trace_start"() <{level = 10 : i32, message = "bqd,bkd->bqk"}> : () -> ()
    %cst_23 = arith.constant dense<0.000000e+00> : vector<2x8x8xf32>
    %55 = tpu.matmul %53, %54, %cst_23 {dimension_numbers = #tpu.dot_dimension_numbers<[2], [2], [1], [1], [0, 0, 0, 1, 1, 1], [0], [0]>} : vector<2x8x8xbf16>, vector<2x8x8xbf16>, vector<2x8x8xf32> -> vector<2x8x8xf32>
    "tpu.trace_stop"() : () -> ()
    %56 = arith.addf %55, %52 : vector<2x8x8xf32>
    %cst_24 = arith.constant dense<0xFF800000> : vector<2x8xf32>
    %57 = vector.multi_reduction <maximumf>, %56, %cst_24 [2] : vector<2x8x8xf32> to vector<2x8xf32>
    %58 = vector.shape_cast %57 : vector<2x8xf32> to vector<2x8x1xf32>
    %59 = vector.broadcast %58 : vector<2x8x1xf32> to vector<2x8x8xf32>
    %60 = arith.subf %56, %59 : vector<2x8x8xf32>
    %61 = math.exp %60 : vector<2x8x8xf32>
    %cst_25 = arith.constant dense<0.000000e+00> : vector<2x8xf32>
    %62 = vector.multi_reduction <add>, %61, %cst_25 [2] : vector<2x8x8xf32> to vector<2x8xf32>
    %63 = vector.shape_cast %62 : vector<2x8xf32> to vector<2x8x1xf32>
    %64 = tpu.reciprocal %63 {approx = true} : vector<2x8x1xf32> -> vector<2x8x1xf32>
    %65 = vector.broadcast %64 : vector<2x8x1xf32> to vector<2x8x8xf32>
    %66 = arith.mulf %61, %65 : vector<2x8x8xf32>
    %67 = arith.truncf %66 : vector<2x8x8xf32> to vector<2x8x8xbf16>
    %68 = vector.extract_strided_slice %49 {offsets = [0, 0, 0], sizes = [2, 8, 8], strides = [1, 1, 1]} : vector<2x8x32xbf16> to vector<2x8x8xbf16>
    "tpu.trace_start"() <{level = 10 : i32, message = "bqk,bkd->bqd"}> : () -> ()
    %cst_26 = arith.constant dense<0.000000e+00> : vector<2x8x8xf32>
    %69 = tpu.matmul %67, %68, %cst_26 {dimension_numbers = #tpu.dot_dimension_numbers<[2], [1], [1], [2], [0, 0, 0, 1, 1, 2], [0], [0]>} : vector<2x8x8xbf16>, vector<2x8x8xbf16>, vector<2x8x8xf32> -> vector<2x8x8xf32>
    "tpu.trace_stop"() : () -> ()
    %70 = vector.extract_strided_slice %43 {offsets = [0, 0, 8], sizes = [2, 8, 8], strides = [1, 1, 1]} : vector<2x8x32xbf16> to vector<2x8x8xbf16>
    %71 = vector.extract_strided_slice %46 {offsets = [0, 0, 8], sizes = [2, 8, 8], strides = [1, 1, 1]} : vector<2x8x32xbf16> to vector<2x8x8xbf16>
    "tpu.trace_start"() <{level = 10 : i32, message = "bqd,bkd->bqk"}> : () -> ()
    %cst_27 = arith.constant dense<0.000000e+00> : vector<2x8x8xf32>
    %72 = tpu.matmul %70, %71, %cst_27 {dimension_numbers = #tpu.dot_dimension_numbers<[2], [2], [1], [1], [0, 0, 0, 1, 1, 1], [0], [0]>} : vector<2x8x8xbf16>, vector<2x8x8xbf16>, vector<2x8x8xf32> -> vector<2x8x8xf32>
    "tpu.trace_stop"() : () -> ()
    %73 = arith.addf %72, %52 : vector<2x8x8xf32>
    %cst_28 = arith.constant dense<0xFF800000> : vector<2x8xf32>
    %74 = vector.multi_reduction <maximumf>, %73, %cst_28 [2] : vector<2x8x8xf32> to vector<2x8xf32>
    %75 = vector.shape_cast %74 : vector<2x8xf32> to vector<2x8x1xf32>
    %76 = vector.broadcast %75 : vector<2x8x1xf32> to vector<2x8x8xf32>
    %77 = arith.subf %73, %76 : vector<2x8x8xf32>
    %78 = math.exp %77 : vector<2x8x8xf32>
    %cst_29 = arith.constant dense<0.000000e+00> : vector<2x8xf32>
    %79 = vector.multi_reduction <add>, %78, %cst_29 [2] : vector<2x8x8xf32> to vector<2x8xf32>
    %80 = vector.shape_cast %79 : vector<2x8xf32> to vector<2x8x1xf32>
    %81 = tpu.reciprocal %80 {approx = true} : vector<2x8x1xf32> -> vector<2x8x1xf32>
    %82 = vector.broadcast %81 : vector<2x8x1xf32> to vector<2x8x8xf32>
    %83 = arith.mulf %78, %82 : vector<2x8x8xf32>
    %84 = arith.truncf %83 : vector<2x8x8xf32> to vector<2x8x8xbf16>
    %85 = vector.extract_strided_slice %49 {offsets = [0, 0, 8], sizes = [2, 8, 8], strides = [1, 1, 1]} : vector<2x8x32xbf16> to vector<2x8x8xbf16>
    "tpu.trace_start"() <{level = 10 : i32, message = "bqk,bkd->bqd"}> : () -> ()
    %cst_30 = arith.constant dense<0.000000e+00> : vector<2x8x8xf32>
    %86 = tpu.matmul %84, %85, %cst_30 {dimension_numbers = #tpu.dot_dimension_numbers<[2], [1], [1], [2], [0, 0, 0, 1, 1, 2], [0], [0]>} : vector<2x8x8xbf16>, vector<2x8x8xbf16>, vector<2x8x8xf32> -> vector<2x8x8xf32>
    "tpu.trace_stop"() : () -> ()
    %87 = vector.extract_strided_slice %43 {offsets = [0, 0, 16], sizes = [2, 8, 8], strides = [1, 1, 1]} : vector<2x8x32xbf16> to vector<2x8x8xbf16>
    %88 = vector.extract_strided_slice %46 {offsets = [0, 0, 16], sizes = [2, 8, 8], strides = [1, 1, 1]} : vector<2x8x32xbf16> to vector<2x8x8xbf16>
    "tpu.trace_start"() <{level = 10 : i32, message = "bqd,bkd->bqk"}> : () -> ()
    %cst_31 = arith.constant dense<0.000000e+00> : vector<2x8x8xf32>
    %89 = tpu.matmul %87, %88, %cst_31 {dimension_numbers = #tpu.dot_dimension_numbers<[2], [2], [1], [1], [0, 0, 0, 1, 1, 1], [0], [0]>} : vector<2x8x8xbf16>, vector<2x8x8xbf16>, vector<2x8x8xf32> -> vector<2x8x8xf32>
    "tpu.trace_stop"() : () -> ()
    %90 = arith.addf %89, %52 : vector<2x8x8xf32>
    %cst_32 = arith.constant dense<0xFF800000> : vector<2x8xf32>
    %91 = vector.multi_reduction <maximumf>, %90, %cst_32 [2] : vector<2x8x8xf32> to vector<2x8xf32>
    %92 = vector.shape_cast %91 : vector<2x8xf32> to vector<2x8x1xf32>
    %93 = vector.broadcast %92 : vector<2x8x1xf32> to vector<2x8x8xf32>
    %94 = arith.subf %90, %93 : vector<2x8x8xf32>
    %95 = math.exp %94 : vector<2x8x8xf32>
    %cst_33 = arith.constant dense<0.000000e+00> : vector<2x8xf32>
    %96 = vector.multi_reduction <add>, %95, %cst_33 [2] : vector<2x8x8xf32> to vector<2x8xf32>
    %97 = vector.shape_cast %96 : vector<2x8xf32> to vector<2x8x1xf32>
    %98 = tpu.reciprocal %97 {approx = true} : vector<2x8x1xf32> -> vector<2x8x1xf32>
    %99 = vector.broadcast %98 : vector<2x8x1xf32> to vector<2x8x8xf32>
    %100 = arith.mulf %95, %99 : vector<2x8x8xf32>
    %101 = arith.truncf %100 : vector<2x8x8xf32> to vector<2x8x8xbf16>
    %102 = vector.extract_strided_slice %49 {offsets = [0, 0, 16], sizes = [2, 8, 8], strides = [1, 1, 1]} : vector<2x8x32xbf16> to vector<2x8x8xbf16>
    "tpu.trace_start"() <{level = 10 : i32, message = "bqk,bkd->bqd"}> : () -> ()
    %cst_34 = arith.constant dense<0.000000e+00> : vector<2x8x8xf32>
    %103 = tpu.matmul %101, %102, %cst_34 {dimension_numbers = #tpu.dot_dimension_numbers<[2], [1], [1], [2], [0, 0, 0, 1, 1, 2], [0], [0]>} : vector<2x8x8xbf16>, vector<2x8x8xbf16>, vector<2x8x8xf32> -> vector<2x8x8xf32>
    "tpu.trace_stop"() : () -> ()
    %104 = vector.extract_strided_slice %43 {offsets = [0, 0, 24], sizes = [2, 8, 8], strides = [1, 1, 1]} : vector<2x8x32xbf16> to vector<2x8x8xbf16>
    %105 = vector.extract_strided_slice %46 {offsets = [0, 0, 24], sizes = [2, 8, 8], strides = [1, 1, 1]} : vector<2x8x32xbf16> to vector<2x8x8xbf16>
    "tpu.trace_start"() <{level = 10 : i32, message = "bqd,bkd->bqk"}> : () -> ()
    %cst_35 = arith.constant dense<0.000000e+00> : vector<2x8x8xf32>
    %106 = tpu.matmul %104, %105, %cst_35 {dimension_numbers = #tpu.dot_dimension_numbers<[2], [2], [1], [1], [0, 0, 0, 1, 1, 1], [0], [0]>} : vector<2x8x8xbf16>, vector<2x8x8xbf16>, vector<2x8x8xf32> -> vector<2x8x8xf32>
    "tpu.trace_stop"() : () -> ()
    %107 = arith.addf %106, %52 : vector<2x8x8xf32>
    %cst_36 = arith.constant dense<0xFF800000> : vector<2x8xf32>
    %108 = vector.multi_reduction <maximumf>, %107, %cst_36 [2] : vector<2x8x8xf32> to vector<2x8xf32>
    %109 = vector.shape_cast %108 : vector<2x8xf32> to vector<2x8x1xf32>
    %110 = vector.broadcast %109 : vector<2x8x1xf32> to vector<2x8x8xf32>
    %111 = arith.subf %107, %110 : vector<2x8x8xf32>
    %112 = math.exp %111 : vector<2x8x8xf32>
    %cst_37 = arith.constant dense<0.000000e+00> : vector<2x8xf32>
    %113 = vector.multi_reduction <add>, %112, %cst_37 [2] : vector<2x8x8xf32> to vector<2x8xf32>
    %114 = vector.shape_cast %113 : vector<2x8xf32> to vector<2x8x1xf32>
    %115 = tpu.reciprocal %114 {approx = true} : vector<2x8x1xf32> -> vector<2x8x1xf32>
    %116 = vector.broadcast %115 : vector<2x8x1xf32> to vector<2x8x8xf32>
    %117 = arith.mulf %112, %116 : vector<2x8x8xf32>
    %118 = arith.truncf %117 : vector<2x8x8xf32> to vector<2x8x8xbf16>
    %119 = vector.extract_strided_slice %49 {offsets = [0, 0, 24], sizes = [2, 8, 8], strides = [1, 1, 1]} : vector<2x8x32xbf16> to vector<2x8x8xbf16>
    "tpu.trace_start"() <{level = 10 : i32, message = "bqk,bkd->bqd"}> : () -> ()
    %cst_38 = arith.constant dense<0.000000e+00> : vector<2x8x8xf32>
    %120 = tpu.matmul %118, %119, %cst_38 {dimension_numbers = #tpu.dot_dimension_numbers<[2], [1], [1], [2], [0, 0, 0, 1, 1, 2], [0], [0]>} : vector<2x8x8xbf16>, vector<2x8x8xbf16>, vector<2x8x8xf32> -> vector<2x8x8xf32>
    "tpu.trace_stop"() : () -> ()
    %121 = tpu.concatenate %69, %86, %103, %120 in 2 : vector<2x8x8xf32>, vector<2x8x8xf32>, vector<2x8x8xf32>, vector<2x8x8xf32> -> vector<2x8x32xf32>
    %122 = vector.shape_cast %121 : vector<2x8x32xf32> to vector<16x32xf32>
    %123 = arith.truncf %122 : vector<16x32xf32> to vector<16x32xbf16>
    %c0_39 = arith.constant 0 : index
    %c0_40 = arith.constant 0 : index
    %c0_41 = arith.constant 0 : index
    %124 = vector.load %arg9[%c0_39, %c0_40, %c0_41] : memref<1x32x32xbf16, #tpu.memory_space<vmem>>, vector<1x32x32xbf16>
    %125 = vector.shape_cast %124 : vector<1x32x32xbf16> to vector<32x32xbf16>
    %cst_42 = arith.constant dense<0.000000e+00> : vector<16x32xf32>
    %126 = tpu.matmul %123, %125, %cst_42 {dimension_numbers = #tpu.dot_dimension_numbers<[1], [0], [0], [1], [0, 0, 1, 1], [], []>} : vector<16x32xbf16>, vector<32x32xbf16>, vector<16x32xf32> -> vector<16x32xf32>
    %c0_43 = arith.constant 0 : index
    %c0_44 = arith.constant 0 : index
    %c0_45 = arith.constant 0 : index
    %127 = vector.load %arg10[%c0_43, %c0_44, %c0_45] : memref<1x1x32xf32, #tpu.memory_space<vmem>>, vector<1x1x32xf32>
    %128 = vector.shape_cast %127 : vector<1x1x32xf32> to vector<1x32xf32>
    %129 = vector.broadcast %128 : vector<1x32xf32> to vector<16x32xf32>
    %130 = arith.addf %126, %129 : vector<16x32xf32>
    %131 = arith.addf %4, %130 : vector<16x32xf32>
    %c0_46 = arith.constant 0 : index
    %c0_47 = arith.constant 0 : index
    %c0_48 = arith.constant 0 : index
    %132 = vector.load %arg11[%c0_46, %c0_47, %c0_48] : memref<1x1x32xf32, #tpu.memory_space<vmem>>, vector<1x1x32xf32>
    %133 = vector.shape_cast %132 : vector<1x1x32xf32> to vector<1x32xf32>
    %c0_49 = arith.constant 0 : index
    %c0_50 = arith.constant 0 : index
    %c0_51 = arith.constant 0 : index
    %134 = vector.load %arg12[%c0_49, %c0_50, %c0_51] : memref<1x1x32xf32, #tpu.memory_space<vmem>>, vector<1x1x32xf32>
    %135 = vector.shape_cast %134 : vector<1x1x32xf32> to vector<1x32xf32>
    %cst_52 = arith.constant dense<0.000000e+00> : vector<16xf32>
    %136 = vector.multi_reduction <add>, %131, %cst_52 [1] : vector<16x32xf32> to vector<16xf32>
    %137 = vector.shape_cast %136 : vector<16xf32> to vector<16x1xf32>
    %cst_53 = arith.constant 3.200000e+01 : f32
    %138 = vector.broadcast %cst_53 : f32 to vector<16x1xf32>
    %139 = arith.divf %137, %138 : vector<16x1xf32>
    %140 = vector.broadcast %139 : vector<16x1xf32> to vector<16x32xf32>
    %141 = arith.subf %131, %140 : vector<16x32xf32>
    %142 = arith.mulf %141, %141 : vector<16x32xf32>
    %cst_54 = arith.constant dense<0.000000e+00> : vector<16xf32>
    %143 = vector.multi_reduction <add>, %142, %cst_54 [1] : vector<16x32xf32> to vector<16xf32>
    %144 = vector.shape_cast %143 : vector<16xf32> to vector<16x1xf32>
    %cst_55 = arith.constant 3.200000e+01 : f32
    %145 = vector.broadcast %cst_55 : f32 to vector<16x1xf32>
    %146 = arith.divf %144, %145 : vector<16x1xf32>
    %147 = vector.broadcast %139 : vector<16x1xf32> to vector<16x32xf32>
    %148 = arith.subf %131, %147 : vector<16x32xf32>
    %cst_56 = arith.constant 9.99999974E-6 : f32
    %149 = vector.broadcast %cst_56 : f32 to vector<16x1xf32>
    %150 = arith.addf %146, %149 : vector<16x1xf32>
    %151 = math.rsqrt %150 : vector<16x1xf32>
    %152 = vector.broadcast %151 : vector<16x1xf32> to vector<16x32xf32>
    %153 = arith.mulf %148, %152 : vector<16x32xf32>
    %154 = vector.broadcast %133 : vector<1x32xf32> to vector<16x32xf32>
    %155 = arith.mulf %153, %154 : vector<16x32xf32>
    %156 = vector.broadcast %135 : vector<1x32xf32> to vector<16x32xf32>
    %157 = arith.addf %155, %156 : vector<16x32xf32>
    %158 = arith.truncf %157 : vector<16x32xf32> to vector<16x32xbf16>
    %c0_57 = arith.constant 0 : index
    %c0_58 = arith.constant 0 : index
    %c0_59 = arith.constant 0 : index
    %159 = vector.load %arg13[%c0_57, %c0_58, %c0_59] : memref<1x32x128xbf16, #tpu.memory_space<vmem>>, vector<1x32x128xbf16>
    %160 = vector.shape_cast %159 : vector<1x32x128xbf16> to vector<32x128xbf16>
    %cst_60 = arith.constant dense<0.000000e+00> : vector<16x128xf32>
    %161 = tpu.matmul %158, %160, %cst_60 {dimension_numbers = #tpu.dot_dimension_numbers<[1], [0], [0], [1], [0, 0, 1, 1], [], []>} : vector<16x32xbf16>, vector<32x128xbf16>, vector<16x128xf32> -> vector<16x128xf32>
    %c0_61 = arith.constant 0 : index
    %c0_62 = arith.constant 0 : index
    %c0_63 = arith.constant 0 : index
    %162 = vector.load %arg14[%c0_61, %c0_62, %c0_63] : memref<1x1x128xf32, #tpu.memory_space<vmem>>, vector<1x1x128xf32>
    %163 = vector.shape_cast %162 : vector<1x1x128xf32> to vector<1x128xf32>
    %164 = vector.broadcast %163 : vector<1x128xf32> to vector<16x128xf32>
    %165 = arith.addf %161, %164 : vector<16x128xf32>
    %cst_64 = arith.constant 1.702000e+00 : f32
    %166 = vector.broadcast %cst_64 : f32 to vector<16x128xf32>
    %167 = arith.mulf %166, %165 : vector<16x128xf32>
    %168 = arith.negf %167 : vector<16x128xf32>
    %169 = math.exp %168 : vector<16x128xf32>
    %cst_65 = arith.constant 1.000000e+00 : f32
    %170 = vector.broadcast %cst_65 : f32 to vector<16x128xf32>
    %171 = arith.addf %170, %169 : vector<16x128xf32>
    %172 = arith.divf %170, %171 : vector<16x128xf32>
    %173 = arith.mulf %165, %172 : vector<16x128xf32>
    %174 = arith.truncf %173 : vector<16x128xf32> to vector<16x128xbf16>
    %c0_66 = arith.constant 0 : index
    %c0_67 = arith.constant 0 : index
    %c0_68 = arith.constant 0 : index
    %175 = vector.load %arg15[%c0_66, %c0_67, %c0_68] : memref<1x128x32xbf16, #tpu.memory_space<vmem>>, vector<1x128x32xbf16>
    %176 = vector.shape_cast %175 : vector<1x128x32xbf16> to vector<128x32xbf16>
    %cst_69 = arith.constant dense<0.000000e+00> : vector<16x32xf32>
    %177 = tpu.matmul %174, %176, %cst_69 {dimension_numbers = #tpu.dot_dimension_numbers<[1], [0], [0], [1], [0, 0, 1, 1], [], []>} : vector<16x128xbf16>, vector<128x32xbf16>, vector<16x32xf32> -> vector<16x32xf32>
    %c0_70 = arith.constant 0 : index
    %c0_71 = arith.constant 0 : index
    %c0_72 = arith.constant 0 : index
    %178 = vector.load %arg16[%c0_70, %c0_71, %c0_72] : memref<1x1x32xf32, #tpu.memory_space<vmem>>, vector<1x1x32xf32>
    %179 = vector.shape_cast %178 : vector<1x1x32xf32> to vector<1x32xf32>
    %180 = vector.broadcast %179 : vector<1x32xf32> to vector<16x32xf32>
    %181 = arith.addf %177, %180 : vector<16x32xf32>
    %182 = arith.addf %131, %181 : vector<16x32xf32>
    %183 = vector.shape_cast %182 : vector<16x32xf32> to vector<2x8x32xf32>
    %c0_73 = arith.constant 0 : index
    %c0_74 = arith.constant 0 : index
    %c0_75 = arith.constant 0 : index
    %184 = vector.load %arg17[%c0_73, %c0_74, %c0_75] : memref<2x8x32xf32, #tpu.memory_space<vmem>>, vector<2x8x32xf32>
    tpu.vector_store %arg17[%c0_73, %c0_74, %c0_75], %183 {strides = array<i32>} : memref<2x8x32xf32, #tpu.memory_space<vmem>>, vector<2x8x32xf32>,
    return
  }
  func.func @transform_0(%arg0: i32, %arg1: i32) -> (i32, i32, i32) {
    %c0_i32 = arith.constant 0 : i32
    %c0_i32_0 = arith.constant 0 : i32
    %c0_i32_1 = arith.constant 0 : i32
    return %arg0, %c0_i32, %c0_i32_0 : i32, i32, i32
  }
  func.func @transform_1(%arg0: i32, %arg1: i32) -> (i32, i32) {
    %c0_i32 = arith.constant 0 : i32
    %c0_i32_0 = arith.constant 0 : i32
    %c0_i32_1 = arith.constant 0 : i32
    return %c0_i32, %c0_i32_0 : i32, i32
  }
  func.func @transform_2(%arg0: i32, %arg1: i32) -> (i32, i32) {
    %c0_i32 = arith.constant 0 : i32
    %c0_i32_0 = arith.constant 0 : i32
    %c0_i32_1 = arith.constant 0 : i32
    return %c0_i32, %c0_i32_0 : i32, i32
  }
  func.func @transform_3(%arg0: i32, %arg1: i32) -> (i32, i32, i32) {
    %c0_i32 = arith.constant 0 : i32
    %c0_i32_0 = arith.constant 0 : i32
    %c0_i32_1 = arith.constant 0 : i32
    return %arg1, %c0_i32, %c0_i32_0 : i32, i32, i32
  }
  func.func @transform_4(%arg0: i32, %arg1: i32) -> (i32, i32, i32) {
    %c0_i32 = arith.constant 0 : i32
    %c0_i32_0 = arith.constant 0 : i32
    %c0_i32_1 = arith.constant 0 : i32
    return %arg1, %c0_i32, %c0_i32_0 : i32, i32, i32
  }
  func.func @transform_5(%arg0: i32, %arg1: i32) -> (i32, i32, i32) {
    %c0_i32 = arith.constant 0 : i32
    %c0_i32_0 = arith.constant 0 : i32
    %c0_i32_1 = arith.constant 0 : i32
    return %arg1, %c0_i32, %c0_i32_0 : i32, i32, i32
  }
  func.func @transform_6(%arg0: i32, %arg1: i32) -> (i32, i32, i32) {
    %c0_i32 = arith.constant 0 : i32
    %c0_i32_0 = arith.constant 0 : i32
    %c0_i32_1 = arith.constant 0 : i32
    return %arg1, %c0_i32, %c0_i32_0 : i32, i32, i32
  }
  func.func @transform_7(%arg0: i32, %arg1: i32) -> (i32, i32, i32) {
    %c0_i32 = arith.constant 0 : i32
    %c0_i32_0 = arith.constant 0 : i32
    %c0_i32_1 = arith.constant 0 : i32
    return %arg1, %c0_i32, %c0_i32_0 : i32, i32, i32
  }
  func.func @transform_8(%arg0: i32, %arg1: i32) -> (i32, i32, i32) {
    %c0_i32 = arith.constant 0 : i32
    %c0_i32_0 = arith.constant 0 : i32
    %c0_i32_1 = arith.constant 0 : i32
    return %arg1, %c0_i32, %c0_i32_0 : i32, i32, i32
  }
  func.func @transform_9(%arg0: i32, %arg1: i32) -> (i32, i32, i32) {
    %c0_i32 = arith.constant 0 : i32
    %c0_i32_0 = arith.constant 0 : i32
    %c0_i32_1 = arith.constant 0 : i32
    return %arg1, %c0_i32, %c0_i32_0 : i32, i32, i32
  }
  func.func @transform_10(%arg0: i32, %arg1: i32) -> (i32, i32, i32) {
    %c0_i32 = arith.constant 0 : i32
    %c0_i32_0 = arith.constant 0 : i32
    %c0_i32_1 = arith.constant 0 : i32
    return %arg1, %c0_i32, %c0_i32_0 : i32, i32, i32
  }
  func.func @transform_11(%arg0: i32, %arg1: i32) -> (i32, i32, i32) {
    %c0_i32 = arith.constant 0 : i32
    %c0_i32_0 = arith.constant 0 : i32
    %c0_i32_1 = arith.constant 0 : i32
    return %arg1, %c0_i32, %c0_i32_0 : i32, i32, i32
  }
  func.func @transform_12(%arg0: i32, %arg1: i32) -> (i32, i32, i32) {
    %c0_i32 = arith.constant 0 : i32
    %c0_i32_0 = arith.constant 0 : i32
    %c0_i32_1 = arith.constant 0 : i32
    return %arg1, %c0_i32, %c0_i32_0 : i32, i32, i32
  }
  func.func @transform_13(%arg0: i32, %arg1: i32) -> (i32, i32, i32) {
    %c0_i32 = arith.constant 0 : i32
    %c0_i32_0 = arith.constant 0 : i32
    %c0_i32_1 = arith.constant 0 : i32
    return %arg1, %c0_i32, %c0_i32_0 : i32, i32, i32
  }
  func.func @transform_14(%arg0: i32, %arg1: i32) -> (i32, i32, i32) {
    %c0_i32 = arith.constant 0 : i32
    %c0_i32_0 = arith.constant 0 : i32
    %c0_i32_1 = arith.constant 0 : i32
    return %arg1, %c0_i32, %c0_i32_0 : i32, i32, i32
  }
  func.func @transform_15(%arg0: i32, %arg1: i32) -> (i32, i32, i32) {
    %c0_i32 = arith.constant 0 : i32
    %c0_i32_0 = arith.constant 0 : i32
    %c0_i32_1 = arith.constant 0 : i32
    return %arg0, %c0_i32, %c0_i32_0 : i32, i32, i32
  }
}

</mosaic_0001>

<bundles_post_ra>
// kernel: tpu_custom_call.1
= control target key start
LH: loop header
LB: loop body
LE: loop exit
PB: predicated region body
PF: predicated region fallthrough
CT: control target
= control target key end

     0   :  { %s3182_s0 = inlined_call_operand.vmem [shape: f32[2,8,32], index: 0, kind: input, shape index: {}]   ;;  %s3183_s1 = inlined_call_operand.vmem [shape: f32[8,32], index: 1, kind: input, shape index: {}]   ;;  %s3184_s2 = inlined_call_operand.vmem [shape: f32[8,8], index: 2, kind: input, shape index: {}]   ;;  %s3185_s3 = inlined_call_operand.vmem [shape: f32[2,1,32], index: 3, kind: input, shape index: {}]   ;;  %s3186_s4 = inlined_call_operand.vmem [shape: f32[2,1,32], index: 4, kind: input, shape index: {}]   ;;  %s3187_s5 = inlined_call_operand.vmem [shape: bf16[2,32,96], index: 5, kind: input, shape index: {}]   ;;  %s3188_s6 = inlined_call_operand.vmem [shape: f32[2,1,96], index: 6, kind: input, shape index: {}]   ;;  %s3189_s7 = inlined_call_operand.vmem [shape: bf16[2,32,32], index: 7, kind: input, shape index: {}]   ;;  %s3190_s8 = inlined_call_operand.vmem [shape: f32[2,1,32], index: 8, kind: input, shape index: {}]   ;;  %s3191_s9 = inlined_call_operand.vmem [shape: f32[2,1,32], index: 9, kind: input, shape index: {}]   ;;  %s3192_s10 = inlined_call_operand.vmem [shape: f32[2,1,32], index: 10, kind: input, shape index: {}]   ;;  %s3193_s11 = inlined_call_operand.vmem [shape: bf16[2,32,128], index: 11, kind: input, shape index: {}]   ;;  %s3194_s12 = inlined_call_operand.vmem [shape: f32[2,1,128], index: 12, kind: input, shape index: {}]   ;;  %s3195_s13 = inlined_call_operand.vmem [shape: bf16[2,128,32], index: 13, kind: input, shape index: {}]   ;;  %s3196_s14 = inlined_call_operand.vmem [shape: f32[2,1,32], index: 14, kind: input, shape index: {}]   ;;  %s3197_s15 = inlined_call_operand.hbm [shape: f32[2,8,32], index: 15, kind: output, shape index: {}]  }
   0x1   :  { %3202 = sst [smem:[#allocation9_spill]] %s3184_s2 }
   0x2   :  { %3203 = sst [smem:[#allocation10_spill]] %s3186_s4 }
   0x3   :  { %3204 = sst [smem:[#allocation11_spill]] %s3187_s5 }
   0x4   :  { %3205 = sst [smem:[#allocation12_spill]] %s3189_s7 }
   0x5   :  { %3206 = sst [smem:[#allocation13_spill]] %s3197_s15 }
   0x6   :  { %20 = vsyncpa [#allocation3], 0  ;;  %s2792_s18 = smov 0   ;;  %s2794_s19 = smov 0  }
   0x7   :  { %s2796_s20 = smov 0  }
   0x8 LB: > { %3207 = sst [smem:[#allocation5_spill]] %s2688_s19  ;;  %s35_s22 = sadd.s32 1, %s2688_s19  ;;  %s2692_s20 = sphi %s2796_s20, %s26_s20   ;;  %s2688_s19 = sphi %s2794_s19, %s3227_s19   ;;  %s2684_s18 = sphi %s2792_s18, %s3226_s18  }
   0x9   : > { %3208 = sst [smem:[#allocation6_spill]] %s2692_s20  ;;  %p36_p0 = scmp.ge.s32.totalorder %s35_s22, 2 }
   0xa   : > { %p2256_p1 = scmp.ge.s32.totalorder %s2692_s20, 1  ;;  %p555_p2 = scmp.lt.s32.totalorder %s2692_s20, 3 }
   0xb   : > { %s3229_s22 = smov (%p36_p0, %s35_s22), 0 }
   0xc   : > { %3209 = sst [smem:[#allocation7_spill]] %s3229_s22  ;;  %p556_p3 = pnand %p2256_p1, %p555_p2 }
   0xe   : > { %559 = sbr.rel (%p556_p3) target bundleno = 4211 (0x1073), region = 80 }
  0x15   : > { %p648_p4 = scmp.lt.s32.totalorder %s2684_s18, 1  ;;  %s3211_s5 = sld [smem:[#allocation11_spill]] }
  0x16   : > { %s3212_s7 = sld [smem:[#allocation12_spill]]  ;;  %p2265_p5 = scmp.ne.s32.totalorder %s2684_s18, 0 }
  0x17   : > { %s2811_s23 = scalar_select %p648_p4, %s2684_s18, 1 }
  0x18   : > { %697 = sbr.rel (%p2265_p5) target bundleno = 33 (0x21), region = 84  ;;  %v698_v0 = vld [vmem:[%s3182_s0] sm:$0xff] (!%p2265_p5)  ;;  %v699_v2 = vld [vmem:[%s3182_s0 + $0x8] sm:$0xff] (!%p2265_p5)  ;;  %vm708_vm0 = vcmask (!%p2265_p5), 261120  }
  0x19   : > { %s2317_s30 = sshll.u32 %s2811_s23, 4  ;;  %s672_s4 = scalar_lea.vmem %s3191_s9, %s2811_s23  ;;  %v702_v1 = vld [vmem:[%s3183_s1] sm:$0xff] (!%p2265_p5)  ;;  %v700_v3 = vpack.c.bf16 (!%p2265_p5), %v698_v0, %v698_v0  ;;  %v701_v5 = vpack.c.bf16 (!%p2265_p5), %v699_v2, %v699_v2 }
  0x1a   : > { %s675_s21 = scalar_lea.vmem %s3192_s10, %s2811_s23  ;;  %s691_s16 = scalar_lea.vmem %s3196_s14, %s2811_s23  ;;  %v703_v4 = vpack.c.bf16 (!%p2265_p5), %v702_v1, %v702_v1 }
  0x1b   : > { %s2829_s22 = scalar_lea.vmem %s3211_s5, %s2317_s30  ;;  %s2851_s5 = scalar_lea.vmem %s3193_s11, %s2317_s30 }
  0x1c   : > { %s2834_s20 = scalar_lea.vmem %s3212_s7, %s2317_s30  ;;  %s683_s7 = scalar_lea.vmem %s3194_s12, %s2811_s23  ;;  %v704_v6 = vadd.bf16 (!%p2265_p5), %v703_v4, %v700_v3  ;;  %v705_v7 = vadd.bf16 (!%p2265_p5), %v703_v4, %v701_v5 }
  0x1d   : > { %3213 = sst [smem:[#allocation8_spill]] %s2834_s20  ;;  %s2320_s20 = sshll.u32 %s2811_s23, 6 }
  0x1e   : > { %s2861_s27 = scalar_lea.vmem %s3195_s13, %s2320_s20  ;;  %v706_v8 = vunpack.c.l.bf16 (!%p2265_p5), %v704_v6  ;;  %v707_v9 = vunpack.c.l.bf16 (!%p2265_p5), %v705_v7 }
  0x20   : > { %709 = vst.msk [vmem:[#allocation2] sm:$0xff] %vm708_vm0, %v706_v8  ;;  %710 = vst.msk [vmem:[#allocation2 + $0x8] sm:$0xff] %vm708_vm0, %v707_v9 }
  0x21 PF: > { %vm715_vm1 = vcmask 261120   ;;  %v2578_v24 = vld [vmem:[%s2829_s22] sm:$0xff]   ;;  %v2694_v25 = vmov 0.0   ;;  %v2579_v26 = vld [vmem:[%s2829_s22 + $0x8] sm:$0xff]   ;;  %vm2695_vm2 = vmmov 0   ;;  %s3214_s22 = scalar_lea.vmem %s3185_s3, %s2811_s23  ;;  %s3215_s29 = sld [smem:[#allocation10_spill]] }
  0x22   : > { %2375 = vmatprep.subr.bf16.mxu0 %v2694_v25  ;;  %2395 = vmatprep.subr.bf16.mxu1 %v2694_v25  ;;  %v2266_v35 = vld [vmem:[%s3214_s22] ss:$0 sm:$0xff]  ;;  %s3217_s30 = scalar_lea.vmem %s3188_s6, %s2811_s23  ;;  %s2696_s25 = smov 96   ;;  %vm843_vm3 = vcmask 64512   ;;  %vm968_vm4 = vcmask 1043456   ;;  %vm1746_vm5 = vcmask 130048  }
  0x23   : > { %2376 = vmatpush3.bf16.msra.mxu0 %v2578_v24  ;;  %2379 = vmatprep.mubr.msk.bf16.mxu0 %vm2695_vm2, %v2694_v25  ;;  %v2268_v44 = vld [vmem:[%s3217_s30] ss:$0 sm:$0xff]  ;;  %s3218_s18 = sld [smem:[#allocation9_spill]]  ;;  %s2697_s20 = smov 64   ;;  %vm1749_vm6 = vcmask 195584  }
  0x24   : > { %2377 = vmatprep.subr.bf16.mxu0 %v2694_v25  ;;  %2397 = vmatprep.mubr.msk.bf16.mxu1 %vm2695_vm2, %v2694_v25  ;;  %s2698_s22 = smov 88   ;;  %s2699_s2 = smov 120  }
  0x25   : > { %s2700_s26 = smov 56   ;;  %s2703_s17 = smov 48  }
  0x26   : > { %s2704_s24 = smov 72   ;;  %s2705_s30 = smov 104  }
  0x27   : > { %v2876_v10 = vld [vmem:[#allocation2] sm:$0xff]  ;;  %v2878_v11 = vld [vmem:[#allocation2 + $0x8] sm:$0xff]  ;;  %2378 = vmatpush3.bf16.msra.mxu0 %v2579_v26  ;;  %s3216_s28 = scalar_lea.vmem %s3215_s29, %s2811_s23  ;;  %s2701_s29 = smov 80  }
  0x28   : > { %v716_v12 = vsel %vm715_vm1, %v2876_v10, 0.0  ;;  %v719_v13 = vsel %vm715_vm1, %v2878_v11, 0.0  ;;  %2383 = vmatprep.subr.bf16.mxu0 %v2694_v25  ;;  %v2267_v39 = vld [vmem:[%s3216_s28] ss:$0 sm:$0xff]  ;;  %s2702_s28 = smov 112   ;;  %s2707_s15 = smov 8  }
  0x29   : > { %717 = vadd.xlane.f32.xlu0 %v716_v12  ;;  %v2941_v61 = vld [vmem:[%s3218_s18] sm:$0xff]  ;;  %s2708_s19 = smov 16   ;;  %s3219_s18 = sld [smem:[#allocation8_spill]] }
  0x2d   : > { %720 = vadd.xlane.f32.xlu0 %v719_v13 }
  0xb6   : > { %v718_v14 = vpop.xlane.xlu0 %717 }
  0xb7   : > { %v723_v15 = vmul.f32 0.03125, %v718_v14 }
  0xb9   : > { %v725_v16 = vsub.f32 %v2876_v10, %v723_v15 }
  0xba   : > { %v721_v17 = vpop.xlane.xlu0 %720 }
  0xbb   : > { %v724_v18 = vmul.f32 0.03125, %v721_v17  ;;  %v727_v19 = vmul.f32 %v725_v16, %v725_v16 }
  0xbd   : > { %v726_v20 = vsub.f32 %v2878_v11, %v724_v18  ;;  %v729_v21 = vsel %vm715_vm1, %v727_v19, 0.0 }
  0xbe   : > { %730 = vadd.xlane.f32.xlu1 %v729_v21 }
  0xbf   : > { %v728_v22 = vmul.f32 %v726_v20, %v726_v20 }
  0xc1   : > { %v732_v23 = vsel %vm715_vm1, %v728_v22, 0.0 }
  0xc2   : > { %733 = vadd.xlane.f32.xlu1 %v732_v23 }
 0x14b   : > { %v731_v27 = vpop.xlane.xlu1 %730 }
 0x14c   : > { %v735_v28 = vmul.f32 0.03125, %v731_v27 }
 0x14e   : > { %v737_v29 = vadd.f32 1e-05, %v735_v28 }
 0x14f   : > { %v734_v30 = vpop.xlane.xlu1 %733 }
 0x150   : > { %2592 = vrsqrt.f32 %v737_v29  ;;  %v736_v31 = vmul.f32 0.03125, %v734_v30 }
 0x152   : > { %v738_v32 = vadd.f32 1e-05, %v736_v31 }
 0x154   : > { %2594 = vrsqrt.f32 %v738_v32 }
 0x15a   : > { %v2593_v33 = vpop.eup %2592 }
 0x15b   : > { %v741_v34 = vmul.f32 %v2593_v33, %v725_v16 }
 0x15d   : > { %v749_v38 = vmul.f32 %v2266_v35, %v741_v34 }
 0x15e   : > { %v2595_v36 = vpop.eup %2594 }
 0x15f   : > { %v742_v37 = vmul.f32 %v2595_v36, %v726_v20  ;;  %v757_v41 = vadd.f32 %v2267_v39, %v749_v38 }
 0x161   : > { %v750_v40 = vmul.f32 %v2266_v35, %v742_v37 }
 0x163   : > { %v758_v42 = vadd.f32 %v2267_v39, %v750_v40 }
 0x165   : > { %v759_v43 = vpack.c.bf16 %v758_v42, %v757_v41 }
 0x167   : > { %2380 = vmatmul.mubr.msk.bf16.vlgmr.msra.gmra.mrb[0].mxu0 %vm715_vm1, %v759_v43 }
 0x168   : > { %2385 = vmatprep.mubr.msk.bf16.mxu0 %vm2695_vm2, %v2694_v25 }
 0x23a   : > { %v820_v45 = vpop.f32.mrb[0].mxu0 }
 0x23b   : > { %v821_v46 = vadd.f32 %v2268_v44, %v820_v45  ;;  %v2381_v47 = vpop.f32.mrb[1].mxu0 }
 0x23c   : > { %v823_v48 = vpop.f32.mrb[2].mxu0 }
 0x23d   : > { %v2916_v49 = vpack.c.bf16 %v821_v46, %v821_v46  ;;  %v824_v50 = vadd.f32 %v2268_v44, %v823_v48  ;;  %v2382_v51 = vpop.f32.mrb[3].mxu0  ;;  %v827_v55 = vmul.f32 0.35355338, %v821_v46 }
 0x23f   : > { %v2918_v52 = vpack.c.bf16 %v824_v50, %v824_v50  ;;  %841 = vrot.lane.b32.xlu0 %v2916_v49, %s2696_s25  ;;  %v2924_v57 = vpack.c.bf16 %v827_v55, %v827_v55  ;;  %v828_v59 = vmul.f32 0.35355338, %v824_v50 }
 0x241   : > { %891 = vrot.lane.b32.xlu1 %v2918_v52, %s2696_s25  ;;  %v2932_v60 = vpack.c.bf16 %v828_v59, %v828_v59  ;;  %s2706_s25 = smov 40  }
 0x2b1   : > { %v842_v53 = vpop.permute.xlu0 %841 }
 0x2b2   : > { %v848_v54 = vsel %vm843_vm3, %v842_v53, 0 }
 0x2b3   : > { %2384 = vmatpush3.bf16.xpose.msra.mxu0 %v848_v54  ;;  %v892_v56 = vpop.permute.xlu1 %891 }
 0x2b4   : > { %2389 = vmatprep.subr.bf16.mxu0 %v2694_v25  ;;  %v897_v58 = vsel %vm843_vm3, %v892_v56, 0 }
 0x2ba   : > { %2386 = vmatmul.mubr.msk.bf16.vlgmr.msra.gmra.mrb[4].mxu0 %vm843_vm3, %v2924_v57 }
 0x2bb   : > { %2390 = vmatpush3.bf16.xpose.msra.mxu0 %v897_v58  ;;  %2391 = vmatprep.mubr.msk.bf16.mxu0 %vm2695_vm2, %v2694_v25 }
 0x2bc   : > { %2401 = vmatprep.subr.bf16.mxu0 %v2694_v25 }
 0x2c2   : > { %2392 = vmatmul.mubr.msk.bf16.vlgmr.msra.gmra.mrb[8].mxu0 %vm843_vm3, %v2932_v60 }
 0x2c3   : > { %2403 = vmatprep.mubr.msk.bf16.mxu0 %vm2695_vm2, %v2694_v25 }
 0x38d   : > { %v884_v62 = vpop.f32.mrb[4].mxu0 }
 0x38e   : > { %v885_v63 = vadd.f32 %v884_v62, %v2941_v61  ;;  %v2387_v0 = vpop.f32.mrb[5].mxu0 }
 0x38f   : > { %v887_v1 = vpop.f32.mrb[6].mxu0 }
 0x390   : > { %v2388_v2 = vpop.f32.mrb[7].mxu0  ;;  %v939_v3 = vsel %vm843_vm3, %v885_v63, -inf }
 0x391   : > { %940 = vmax.xlane.f32.xlu1 %v939_v3 }
 0x395   : > { %v933_v4 = vpop.f32.mrb[8].mxu0 }
 0x396   : > { %v934_v5 = vadd.f32 %v933_v4, %v2941_v61  ;;  %v2393_v6 = vpop.f32.mrb[9].mxu0 }
 0x397   : > { %v936_v7 = vpop.f32.mrb[10].mxu0 }
 0x398   : > { %v2394_v8 = vpop.f32.mrb[11].mxu0  ;;  %v942_v9 = vsel %vm843_vm3, %v934_v5, -inf }
 0x399   : > { %943 = vmax.xlane.f32.xlu0 %v942_v9 }
 0x3a2   : > { %1012 = vrot.lane.b32.xlu1 %v2918_v52, %s2697_s20 }
 0x3a6   : > { %1062 = vrot.lane.b32.xlu1 %v2916_v49, %s2698_s22 }
 0x41e   : > { %v941_v12 = vpop.xlane.xlu1 %940 }
 0x41f   : > { %v945_v13 = vsub.f32 %v885_v63, %v941_v12 }
 0x421   : > { %v947_v14 = vmul.f32 1.442695, %v945_v13 }
 0x422   : > { %v1013_v15 = vpop.permute.xlu1 %1012 }
 0x423   : > { %2596 = vpow2.f32 %v947_v14  ;;  %v1018_v16 = vsel %vm968_vm4, %v1013_v15, 0 }
 0x424   : > { %2402 = vmatpush3.bf16.msra.mxu0 %v1018_v16 }
 0x425   : > { %2413 = vmatprep.subr.bf16.mxu0 %v2694_v25 }
 0x426   : > { %v944_v17 = vpop.xlane.xlu0 %943  ;;  %v1063_v26 = vpop.permute.xlu1 %1062 }
 0x427   : > { %v946_v18 = vsub.f32 %v934_v5, %v944_v17  ;;  %v1068_v33 = vsel %vm843_vm3, %v1063_v26, 0 }
 0x429   : > { %v949_v19 = vmul.f32 1.442695, %v946_v18 }
 0x42b   : > { %2598 = vpow2.f32 %v949_v19 }
 0x42d   : > { %v2597_v20 = vpop.eup %2596 }
 0x42e   : > { %v951_v21 = vsel %vm843_vm3, %v2597_v20, 0.0 }
 0x42f   : > { %952 = vadd.xlane.f32.xlu0 %v951_v21 }
 0x435   : > { %v2599_v22 = vpop.eup %2598 }
 0x436   : > { %v954_v23 = vsel %vm843_vm3, %v2599_v22, 0.0 }
 0x437   : > { %955 = vadd.xlane.f32.xlu1 %v954_v23 }
 0x445   : > { %963 = vrot.lane.b32.xlu0 %v2916_v49, %s2697_s20  ;;  %s2709_s20 = smov 24  }
 0x448   : > { %1112 = vrot.lane.b32.xlu1 %v2918_v52, %s2698_s22 }
 0x449   : > { %1060 = vrot.lane.b32.xlu0 %v2924_v57, %s2699_s2 }
 0x44c   : > { %1110 = vrot.lane.b32.xlu1 %v2932_v60, %s2699_s2 }
 0x4bc   : > { %v953_v24 = vpop.xlane.xlu0 %952 }
 0x4bd   : > { %2600 = vrcp.f32 %v953_v24 }
 0x4c0   : > { %v964_v27 = vpop.permute.xlu0 %963 }
 0x4c1   : > { %v970_v28 = vsel %vm968_vm4, %v964_v27, 0 }
 0x4c2   : > { %2396 = vmatpush3.bf16.msra.mxu1 %v970_v28 }
 0x4c3   : > { %2407 = vmatprep.subr.bf16.mxu1 %v2694_v25 }
 0x4c4   : > { %v956_v29 = vpop.xlane.xlu1 %955  ;;  %v1061_v38 = vpop.permute.xlu0 %1060 }
 0x4c5   : > { %2602 = vrcp.f32 %v956_v29 }
 0x4c7   : > { %v2601_v30 = vpop.eup %2600 }
 0x4c8   : > { %v959_v31 = vmul.f32 %v2601_v30, %v2597_v20  ;;  %v1113_v36 = vpop.permute.xlu1 %1112 }
 0x4c9   : > { %v1118_v39 = vsel %vm843_vm3, %v1113_v36, 0 }
 0x4ca   : > { %v961_v32 = vpack.c.bf16 %v959_v31, %v959_v31 }
 0x4cc   : > { %2398 = vmatmul.mubr.msk.bf16.vlgmr.msra.gmra.mrb[0].mxu1 %vm843_vm3, %v961_v32  ;;  %v1111_v40 = vpop.permute.xlu1 %1110 }
 0x4cd   : > { %2408 = vmatpush3.bf16.xpose.msra.mxu1 %v1068_v33  ;;  %2409 = vmatprep.mubr.msk.bf16.mxu1 %vm2695_vm2, %v2694_v25 }
 0x4ce   : > { %2419 = vmatprep.subr.bf16.mxu1 %v2694_v25 }
 0x4cf   : > { %v2603_v34 = vpop.eup %2602 }
 0x4d0   : > { %v960_v35 = vmul.f32 %v2603_v34, %v2599_v22 }
 0x4d2   : > { %v962_v37 = vpack.c.bf16 %v960_v35, %v960_v35 }
 0x4d4   : > { %2404 = vmatmul.mubr.msk.bf16.vlgmr.msra.gmra.mrb[12].mxu0 %vm843_vm3, %v962_v37  ;;  %2410 = vmatmul.mubr.msk.bf16.vlgmr.msra.gmra.mrb[4].mxu1 %vm843_vm3, %v1061_v38 }
 0x4d5   : > { %2414 = vmatpush3.bf16.xpose.msra.mxu0 %v1118_v39  ;;  %2415 = vmatprep.mubr.msk.bf16.mxu0 %vm2695_vm2, %v2694_v25 }
 0x4d6   : > { %2425 = vmatprep.subr.bf16.mxu0 %v2694_v25  ;;  %2421 = vmatprep.mubr.msk.bf16.mxu1 %vm2695_vm2, %v2694_v25 }
 0x4dc   : > { %2416 = vmatmul.mubr.msk.bf16.vlgmr.msra.gmra.mrb[16].mxu0 %vm843_vm3, %v1111_v40 }
 0x4dd   : > { %2427 = vmatprep.mubr.msk.bf16.mxu0 %vm2695_vm2, %v2694_v25 }
 0x59f   : > { %v2975_v41 = vpop.f32.mrb[0].mxu1 }
 0x5a0   : > { %v2399_v42 = vpop.f32.mrb[1].mxu1 }
 0x5a1   : > { %v1009_v43 = vpop.f32.mrb[2].mxu1 }
 0x5a2   : > { %v2400_v44 = vpop.f32.mrb[3].mxu1 }
 0x5a7   : > { %v2977_v45 = vpop.f32.mrb[12].mxu0  ;;  %v1104_v46 = vpop.f32.mrb[4].mxu1 }
 0x5a8   : > { %v1105_v47 = vadd.f32 %v1104_v46, %v2941_v61  ;;  %v2405_v48 = vpop.f32.mrb[13].mxu0  ;;  %v2411_v50 = vpop.f32.mrb[5].mxu1 }
 0x5a9   : > { %v1057_v51 = vpop.f32.mrb[14].mxu0  ;;  %v1107_v53 = vpop.f32.mrb[6].mxu1 }
 0x5aa   : > { %v2406_v54 = vpop.f32.mrb[15].mxu0  ;;  %v2412_v55 = vpop.f32.mrb[7].mxu1  ;;  %v1160_v56 = vsel %vm843_vm3, %v1105_v47, -inf }
 0x5ab   : > { %1161 = vmax.xlane.f32.xlu0 %v1160_v56 }
 0x5af   : > { %v1154_v58 = vpop.f32.mrb[16].mxu0 }
 0x5b0   : > { %v1155_v59 = vadd.f32 %v1154_v58, %v2941_v61  ;;  %v2417_v62 = vpop.f32.mrb[17].mxu0 }
 0x5b1   : > { %v1157_v63 = vpop.f32.mrb[18].mxu0 }
 0x5b2   : > { %v2418_v0 = vpop.f32.mrb[19].mxu0  ;;  %v1163_v1 = vsel %vm843_vm3, %v1155_v59, -inf }
 0x5b3   : > { %1164 = vmax.xlane.f32.xlu1 %v1163_v1 }
 0x5c4   : > { %1232 = vrot.lane.b32.xlu1 %v2918_v52, %s2700_s26 }
 0x5c8   : > { %1282 = vrot.lane.b32.xlu1 %v2916_v49, %s2701_s29 }
 0x5cc   : > { %1332 = vrot.lane.b32.xlu1 %v2918_v52, %s2701_s29 }
 0x5d0   : > { %1330 = vrot.lane.b32.xlu1 %v2932_v60, %s2702_s28 }
 0x638   : > { %v1162_v2 = vpop.xlane.xlu0 %1161 }
 0x639   : > { %v1166_v3 = vsub.f32 %v1105_v47, %v1162_v2 }
 0x63b   : > { %v1168_v4 = vmul.f32 1.442695, %v1166_v3 }
 0x63d   : > { %2604 = vpow2.f32 %v1168_v4 }
 0x640   : > { %v1165_v5 = vpop.xlane.xlu1 %1164 }
 0x641   : > { %v1167_v6 = vsub.f32 %v1155_v59, %v1165_v5 }
 0x643   : > { %v1170_v7 = vmul.f32 1.442695, %v1167_v6 }
 0x644   : > { %v1233_v8 = vpop.permute.xlu1 %1232 }
 0x645   : > { %2606 = vpow2.f32 %v1170_v7  ;;  %v1238_v9 = vsel %vm968_vm4, %v1233_v8, 0 }
 0x646   : > { %2426 = vmatpush3.bf16.msra.mxu0 %v1238_v9 }
 0x647   : > { %v2605_v12 = vpop.eup %2604  ;;  %2437 = vmatprep.subr.bf16.mxu0 %v2694_v25 }
 0x648   : > { %v1172_v13 = vsel %vm843_vm3, %v2605_v12, 0.0  ;;  %v1283_v23 = vpop.permute.xlu1 %1282 }
 0x649   : > { %1173 = vadd.xlane.f32.xlu0 %v1172_v13  ;;  %v1288_v28 = vsel %vm843_vm3, %v1283_v23, 0 }
 0x64c   : > { %v1333_v27 = vpop.permute.xlu1 %1332 }
 0x64d   : > { %v1338_v30 = vsel %vm843_vm3, %v1333_v27, 0 }
 0x64f   : > { %v2607_v14 = vpop.eup %2606 }
 0x650   : > { %v1175_v15 = vsel %vm843_vm3, %v2607_v14, 0.0  ;;  %v1331_v32 = vpop.permute.xlu1 %1330 }
 0x651   : > { %1176 = vadd.xlane.f32.xlu0 %v1175_v15 }
 0x667   : > { %1184 = vrot.lane.b32.xlu0 %v2916_v49, %s2700_s26  ;;  %s3220_s26 = scalar_lea.vmem %s3190_s8, %s2811_s23 }
 0x66b   : > { %1280 = vrot.lane.b32.xlu0 %v2924_v57, %s2702_s28 }
 0x6d6   : > { %v1174_v16 = vpop.xlane.xlu0 %1173 }
 0x6d7   : > { %2608 = vrcp.f32 %v1174_v16 }
 0x6de   : > { %v1177_v17 = vpop.xlane.xlu0 %1176 }
 0x6df   : > { %2610 = vrcp.f32 %v1177_v17 }
 0x6e1   : > { %v2609_v18 = vpop.eup %2608 }
 0x6e2   : > { %v1180_v19 = vmul.f32 %v2609_v18, %v2605_v12  ;;  %v1185_v20 = vpop.permute.xlu0 %1184 }
 0x6e3   : > { %v1190_v21 = vsel %vm968_vm4, %v1185_v20, 0 }
 0x6e4   : > { %2420 = vmatpush3.bf16.msra.mxu1 %v1190_v21  ;;  %v1182_v22 = vpack.c.bf16 %v1180_v19, %v1180_v19 }
 0x6e5   : > { %2431 = vmatprep.subr.bf16.mxu1 %v2694_v25 }
 0x6e6   : > { %v1281_v31 = vpop.permute.xlu0 %1280 }
 0x6e7   : > { %2422 = vmatmul.mubr.msk.bf16.vlgmr.msra.gmra.mrb[8].mxu1 %vm843_vm3, %v1182_v22 }
 0x6e8   : > { %2433 = vmatprep.mubr.msk.bf16.mxu1 %vm2695_vm2, %v2694_v25 }
 0x6e9   : > { %v2611_v24 = vpop.eup %2610 }
 0x6ea   : > { %v1181_v26 = vmul.f32 %v2611_v24, %v2607_v14 }
 0x6ec   : > { %v1183_v29 = vpack.c.bf16 %v1181_v26, %v1181_v26 }
 0x6ed   : > { %2432 = vmatpush3.bf16.xpose.msra.mxu1 %v1288_v28 }
 0x6ee   : > { %2428 = vmatmul.mubr.msk.bf16.vlgmr.msra.gmra.mrb[20].mxu0 %vm843_vm3, %v1183_v29  ;;  %2443 = vmatprep.subr.bf16.mxu1 %v2694_v25 }
 0x6ef   : > { %2438 = vmatpush3.bf16.xpose.msra.mxu0 %v1338_v30  ;;  %2439 = vmatprep.mubr.msk.bf16.mxu0 %vm2695_vm2, %v2694_v25 }
 0x6f0   : > { %2449 = vmatprep.subr.bf16.mxu0 %v2694_v25 }
 0x6f4   : > { %2434 = vmatmul.mubr.msk.bf16.vlgmr.msra.gmra.mrb[12].mxu1 %vm843_vm3, %v1281_v31 }
 0x6f5   : > { %2445 = vmatprep.mubr.msk.bf16.mxu1 %vm2695_vm2, %v2694_v25 }
 0x6f6   : > { %2440 = vmatmul.mubr.msk.bf16.vlgmr.msra.gmra.mrb[24].mxu0 %vm843_vm3, %v1331_v32 }
 0x6f7   : > { %2451 = vmatprep.mubr.msk.bf16.mxu0 %vm2695_vm2, %v2694_v25 }
 0x7ba   : > { %v3011_v33 = vpop.f32.mrb[8].mxu1 }
 0x7bb   : > { %v2423_v34 = vpop.f32.mrb[9].mxu1 }
 0x7bc   : > { %v1229_v35 = vpop.f32.mrb[10].mxu1 }
 0x7bd   : > { %v2424_v36 = vpop.f32.mrb[11].mxu1 }
 0x7c1   : > { %v3013_v37 = vpop.f32.mrb[20].mxu0 }
 0x7c2   : > { %v2563_v38 = vpack.i.bf16 %v3013_v37, %v3011_v33  ;;  %v2429_v39 = vpop.f32.mrb[21].mxu0 }
 0x7c3   : > { %v1277_v40 = vpop.f32.mrb[22].mxu0 }
 0x7c4   : > { %v2430_v42 = vpop.f32.mrb[23].mxu0 }
 0x7c7   : > { %v1324_v43 = vpop.f32.mrb[12].mxu1 }
 0x7c8   : > { %v1325_v44 = vadd.f32 %v1324_v43, %v2941_v61  ;;  %v2435_v46 = vpop.f32.mrb[13].mxu1 }
 0x7c9   : > { %v1327_v47 = vpop.f32.mrb[14].mxu1  ;;  %v1374_v48 = vpop.f32.mrb[24].mxu0 }
 0x7ca   : > { %v1375_v50 = vadd.f32 %v1374_v48, %v2941_v61  ;;  %v2436_v51 = vpop.f32.mrb[15].mxu1  ;;  %v2441_v53 = vpop.f32.mrb[25].mxu0  ;;  %v1380_v54 = vsel %vm843_vm3, %v1325_v44, -inf }
 0x7cb   : > { %1381 = vmax.xlane.f32.xlu0 %v1380_v54  ;;  %v1377_v55 = vpop.f32.mrb[26].mxu0 }
 0x7cc   : > { %v2442_v56 = vpop.f32.mrb[27].mxu0  ;;  %v1383_v58 = vsel %vm843_vm3, %v1375_v50, -inf }
 0x7cd   : > { %1384 = vmax.xlane.f32.xlu1 %v1383_v58 }
 0x7de   : > { %1452 = vrot.lane.b32.xlu1 %v2918_v52, %s2703_s17 }
 0x7e2   : > { %1502 = vrot.lane.b32.xlu1 %v2916_v49, %s2704_s24 }
 0x7e6   : > { %1552 = vrot.lane.b32.xlu1 %v2918_v52, %s2704_s24 }
 0x7ea   : > { %1550 = vrot.lane.b32.xlu1 %v2932_v60, %s2705_s30 }
 0x858   : > { %v1382_v59 = vpop.xlane.xlu0 %1381 }
 0x859   : > { %v1386_v62 = vsub.f32 %v1325_v44, %v1382_v59 }
 0x85a   : > { %v1385_v63 = vpop.xlane.xlu1 %1384 }
 0x85b   : > { %v1388_v0 = vmul.f32 1.442695, %v1386_v62  ;;  %v1387_v1 = vsub.f32 %v1375_v50, %v1385_v63 }
 0x85d   : > { %2612 = vpow2.f32 %v1388_v0  ;;  %v1390_v2 = vmul.f32 1.442695, %v1387_v1 }
 0x85e   : > { %v1453_v3 = vpop.permute.xlu1 %1452 }
 0x85f   : > { %2614 = vpow2.f32 %v1390_v2  ;;  %v1458_v4 = vsel %vm968_vm4, %v1453_v3, 0 }
 0x860   : > { %2450 = vmatpush3.bf16.msra.mxu0 %v1458_v4 }
 0x861   : > { %2461 = vmatprep.subr.bf16.mxu0 %v2694_v25 }
 0x862   : > { %v1503_v15 = vpop.permute.xlu1 %1502 }
 0x866   : > { %v1553_v20 = vpop.permute.xlu1 %1552 }
 0x867   : > { %v2613_v5 = vpop.eup %2612  ;;  %v1558_v22 = vsel %vm843_vm3, %v1553_v20, 0 }
 0x868   : > { %v1392_v6 = vsel %vm843_vm3, %v2613_v5, 0.0 }
 0x869   : > { %v2615_v7 = vpop.eup %2614  ;;  %1393 = vadd.xlane.f32.xlu0 %v1392_v6 }
 0x86a   : > { %v1395_v60 = vsel %vm843_vm3, %v2615_v7, 0.0  ;;  %v1551_v24 = vpop.permute.xlu1 %1550 }
 0x86d   : > { %1396 = vadd.xlane.f32.xlu0 %v1395_v60 }
 0x883   : > { %1404 = vrot.lane.b32.xlu0 %v2916_v49, %s2703_s17 }
 0x887   : > { %1500 = vrot.lane.b32.xlu0 %v2924_v57, %s2705_s30  ;;  %v1508_v57 = vsel %vm843_vm3, %v1503_v15, 0  ;;  %s2710_s30 = smov [#allocation2]  }
 0x8f6   : > { %v1394_v8 = vpop.xlane.xlu0 %1393 }
 0x8f7   : > { %2616 = vrcp.f32 %v1394_v8  ;;  %v2580_v8 = vld [vmem:[%s3219_s18] sm:$0xff]  }
 0x8fa   : > { %v1397_v9 = vpop.xlane.xlu0 %1396 }
 0x8fb   : > { %2618 = vrcp.f32 %v1397_v9  ;;  %v2581_v9 = vld [vmem:[%s3219_s18 + $0x8] sm:$0xff]  }
 0x8fe   : > { %v1405_v12 = vpop.permute.xlu0 %1404 }
 0x8ff   : > { %v1410_v13 = vsel %vm968_vm4, %v1405_v12, 0 }
 0x900   : > { %2444 = vmatpush3.bf16.msra.mxu1 %v1410_v13 }
 0x901   : > { %v2617_v14 = vpop.eup %2616  ;;  %2455 = vmatprep.subr.bf16.mxu1 %v2694_v25 }
 0x902   : > { %v1400_v16 = vmul.f32 %v2617_v14, %v2613_v5  ;;  %v1501_v23 = vpop.permute.xlu0 %1500 }
 0x904   : > { %v1402_v17 = vpack.c.bf16 %v1400_v16, %v1400_v16 }
 0x905   : > { %v2619_v18 = vpop.eup %2618 }
 0x906   : > { %v1401_v19 = vmul.f32 %v2619_v18, %v2615_v7  ;;  %2446 = vmatmul.mubr.msk.bf16.vlgmr.msra.gmra.mrb[16].mxu1 %vm843_vm3, %v1402_v17 }
 0x907   : > { %2457 = vmatprep.mubr.msk.bf16.mxu1 %vm2695_vm2, %v2694_v25 }
 0x908   : > { %v1403_v21 = vpack.c.bf16 %v1401_v19, %v1401_v19 }
 0x909   : > { %2456 = vmatpush3.bf16.xpose.msra.mxu1 %v1508_v57 }
 0x90a   : > { %2452 = vmatmul.mubr.msk.bf16.vlgmr.msra.gmra.mrb[28].mxu0 %vm843_vm3, %v1403_v21  ;;  %2467 = vmatprep.subr.bf16.mxu1 %v2694_v25 }
 0x90b   : > { %2462 = vmatpush3.bf16.xpose.msra.mxu0 %v1558_v22  ;;  %2463 = vmatprep.mubr.msk.bf16.mxu0 %vm2695_vm2, %v2694_v25 }
 0x90c   : > { %2473 = vmatprep.subr.bf16.mxu0 %v2694_v25 }
 0x910   : > { %2458 = vmatmul.mubr.msk.bf16.vlgmr.msra.gmra.mrb[20].mxu1 %vm843_vm3, %v1501_v23 }
 0x911   : > { %2469 = vmatprep.mubr.msk.bf16.mxu1 %vm2695_vm2, %v2694_v25 }
 0x912   : > { %2464 = vmatmul.mubr.msk.bf16.vlgmr.msra.gmra.mrb[32].mxu0 %vm843_vm3, %v1551_v24 }
 0x913   : > { %2475 = vmatprep.mubr.msk.bf16.mxu0 %vm2695_vm2, %v2694_v25 }
 0x9d9   : > { %v1446_v26 = vpop.f32.mrb[16].mxu1 }
 0x9da   : > { %v2447_v27 = vpop.f32.mrb[17].mxu1 }
 0x9db   : > { %v1449_v28 = vpop.f32.mrb[18].mxu1 }
 0x9dc   : > { %v2448_v29 = vpop.f32.mrb[19].mxu1 }
 0x9dd   : > { %v1494_v30 = vpop.f32.mrb[28].mxu0 }
 0x9de   : > { %v2568_v31 = vpack.i.bf16 %v1494_v30, %v1446_v26  ;;  %v2453_v32 = vpop.f32.mrb[29].mxu0 }
 0x9df   : > { %v1497_v34 = vpop.f32.mrb[30].mxu0 }
 0x9e0   : > { %v2454_v35 = vpop.f32.mrb[31].mxu0 }
 0x9e3   : > { %v1544_v36 = vpop.f32.mrb[20].mxu1 }
 0x9e4   : > { %v1545_v39 = vadd.f32 %v1544_v36, %v2941_v61  ;;  %v2459_v40 = vpop.f32.mrb[21].mxu1 }
 0x9e5   : > { %v1547_v42 = vpop.f32.mrb[22].mxu1  ;;  %v1594_v43 = vpop.f32.mrb[32].mxu0 }
 0x9e6   : > { %v1595_v44 = vadd.f32 %v1594_v43, %v2941_v61  ;;  %v2460_v46 = vpop.f32.mrb[23].mxu1  ;;  %v2465_v47 = vpop.f32.mrb[33].mxu0  ;;  %v1600_v48 = vsel %vm843_vm3, %v1545_v39, -inf }
 0x9e7   : > { %1601 = vmax.xlane.f32.xlu0 %v1600_v48  ;;  %v1597_v50 = vpop.f32.mrb[34].mxu0 }
 0x9e8   : > { %v2466_v51 = vpop.f32.mrb[35].mxu0  ;;  %v1603_v53 = vsel %vm843_vm3, %v1595_v44, -inf }
 0x9e9   : > { %1604 = vmax.xlane.f32.xlu1 %v1603_v53 }
 0x9fa   : > { %1672 = vrot.lane.b32.xlu1 %v2918_v52, %s2706_s25 }
 0x9fe   : > { %2564 = vrot.lane.b32.xlu1 %v2563_v38, %s2707_s15 }
 0xa02   : > { %2569 = vrot.lane.b32.xlu1 %v2568_v31, %s2708_s19 }
 0xa74   : > { %v1602_v61 = vpop.xlane.xlu0 %1601 }
 0xa75   : > { %v1606_v54 = vsub.f32 %v1545_v39, %v1602_v61 }
 0xa76   : > { %v1605_v55 = vpop.xlane.xlu1 %1604 }
 0xa77   : > { %v1608_v56 = vmul.f32 1.442695, %v1606_v54  ;;  %v1607_v58 = vsub.f32 %v1595_v44, %v1605_v55 }
 0xa79   : > { %2620 = vpow2.f32 %v1608_v56  ;;  %v1610_v59 = vmul.f32 1.442695, %v1607_v58 }
 0xa7a   : > { %v1673_v62 = vpop.permute.xlu1 %1672 }
 0xa7b   : > { %2622 = vpow2.f32 %v1610_v59  ;;  %v1678_v63 = vsel %vm968_vm4, %v1673_v62, 0 }
 0xa7c   : > { %2474 = vmatpush3.bf16.msra.mxu0 %v1678_v63  ;;  %v2582_v63 = vld [vmem:[%s2851_s5] sm:$0xff]  }
 0xa7d   : > { %2487 = vmatprep.subr.bf16.mxu0 %v2694_v25 }
 0xa7e   : > { %v2565_v57 = vpop.permute.xlu1 %2564 }
 0xa7f   : > { %v2567_v22 = vunpack.i.h.bf16 %v2565_v57  ;;  %v2566_v23 = vunpack.i.l.bf16 %v2565_v57  ;;  %v2591_v57 = vld [vmem:[%s2861_s27 + $0x38] sm:$0xff]  }
 0xa81   : > { %v1745_v28 = vsel %vm843_vm3, %v2977_v45, %v2567_v22  ;;  %v1744_v29 = vsel %vm843_vm3, %v2975_v41, %v2566_v23  ;;  %v2292_v45 = vld [vmem:[%s3220_s26] ss:$0 sm:$0xff] }
 0xa82   : > { %v2570_v21 = vpop.permute.xlu1 %2569 }
 0xa83   : > { %v2621_v52 = vpop.eup %2620  ;;  %v2572_v24 = vunpack.i.h.bf16 %v2570_v21  ;;  %v2571_v26 = vunpack.i.l.bf16 %v2570_v21  ;;  %v2298_v21 = vld [vmem:[%s683_s7] ss:$0 sm:$0xff]  ;;  %s3221_s7 = sld [smem:[#allocation6_spill]] }
 0xa84   : > { %v1612_v33 = vsel %vm843_vm3, %v2621_v52, 0.0 }
 0xa85   : > { %v2623_v37 = vpop.eup %2622  ;;  %1613 = vadd.xlane.f32.xlu0 %v1612_v33  ;;  %v1747_v32 = vsel %vm1746_vm5, %v1744_v29, %v2571_v26  ;;  %v1748_v34 = vsel %vm1746_vm5, %v1745_v28, %v2572_v24 }
 0xa86   : > { %v1615_v38 = vsel %vm843_vm3, %v2623_v37, 0.0 }
 0xa89   : > { %1616 = vadd.xlane.f32.xlu0 %v1615_v38  ;;  %s3222_s19 = sadd.s32 4294967295, %s3221_s7  }
 0xa8a   : > { %p3143_p6 = scmp.eq.s32.totalorder %s3222_s19, 1 }
 0xa9f   : > { %1624 = vrot.lane.b32.xlu0 %v2916_v49, %s2706_s25  ;;  %s2076_s25 = sshll.u32 %s2710_s30, 4  ;;  %s2077_s25 = int_to_ptr.vmem [resolvable:$true] %s2076_s25 }
 0xaa0   : > { %s2640_s23 = scalar_lea.vmem %s2077_s25, 256  ;;  %p2647_p10 = scmp.lt.s32.totalorder %s2077_s25, %s2077_s25 }
 0xaa1   : > { %p2641_p7 = scmp.ne.s32.totalorder %s2077_s25, %s2640_s23  ;;  %p2648_p11 = scmp.lt.s32.totalorder %s2640_s23, %s2640_s23 }
 0xaa3   : > { %p2642_p8 = pnand %p2641_p7, %p3143_p6  ;;  %p2649_p12 = por %p2648_p11, %p2647_p10 }
 0xaa5   : > { %p2643_p9 = pneg %p2642_p8 }
 0xaa7   : > { %p2650_p13 = pnand %p2649_p12, %p2643_p9 }
 0xb12   : > { %v1614_v0 = vpop.xlane.xlu0 %1613 }
 0xb13   : > { %2624 = vrcp.f32 %v1614_v0 }
 0xb16   : > { %v1617_v1 = vpop.xlane.xlu0 %1616 }
 0xb17   : > { %2626 = vrcp.f32 %v1617_v1 }
 0xb1a   : > { %v1625_v2 = vpop.permute.xlu0 %1624 }
 0xb1b   : > { %v1630_v3 = vsel %vm968_vm4, %v1625_v2, 0 }
 0xb1c   : > { %2468 = vmatpush3.bf16.msra.mxu1 %v1630_v3 }
 0xb1d   : > { %v2625_v4 = vpop.eup %2624  ;;  %2479 = vmatprep.subr.bf16.mxu1 %v2694_v25 }
 0xb1e   : > { %v1620_v5 = vmul.f32 %v2625_v4, %v2621_v52  ;;  %v2583_v52 = vld [vmem:[%s2851_s5 + $0x8] sm:$0xff]  }
 0xb20   : > { %v1622_v6 = vpack.c.bf16 %v1620_v5, %v1620_v5  ;;  %v2296_v5 = vld [vmem:[%s672_s4] ss:$0 sm:$0xff] }
 0xb21   : > { %v2627_v7 = vpop.eup %2626 }
 0xb22   : > { %v1621_v60 = vmul.f32 %v2627_v7, %v2623_v37  ;;  %2470 = vmatmul.mubr.msk.bf16.vlgmr.msra.gmra.mrb[24].mxu1 %vm843_vm3, %v1622_v6 }
 0xb23   : > { %2483 = vmatprep.mubr.msk.bf16.mxu1 %vm2695_vm2, %v2694_v25  ;;  %2480 = vmatpush3.bf16.msra.mxu1 %v2580_v8 }
 0xb24   : > { %v1623_v49 = vpack.c.bf16 %v1621_v60, %v1621_v60  ;;  %2481 = vmatprep.subr.bf16.mxu1 %v2694_v25 }
 0xb26   : > { %2476 = vmatmul.mubr.msk.bf16.vlgmr.msra.gmra.mrb[36].mxu0 %vm843_vm3, %v1623_v49  ;;  %v2297_v49 = vld [vmem:[%s675_s21] ss:$0 sm:$0xff] }
 0xb27   : > { %2491 = vmatprep.mubr.msk.bf16.mxu0 %vm2695_vm2, %v2694_v25  ;;  %2482 = vmatpush3.bf16.msra.mxu1 %v2581_v9 }
 0xb28   : > { %2495 = vmatprep.subr.bf16.mxu1 %v2694_v25  ;;  %2488 = vmatpush3.bf16.msra.mxu0 %v2582_v63 }
 0xb29   : > { %2489 = vmatprep.subr.bf16.mxu0 %v2694_v25 }
 0xb2c   : > { %2490 = vmatpush3.bf16.msra.mxu0 %v2583_v52 }
 0xbf5   : > { %v1666_v12 = vpop.f32.mrb[24].mxu1 }
 0xbf6   : > { %v2471_v13 = vpop.f32.mrb[25].mxu1 }
 0xbf7   : > { %v1669_v14 = vpop.f32.mrb[26].mxu1 }
 0xbf8   : > { %v2472_v15 = vpop.f32.mrb[27].mxu1  ;;  %v2584_v14 = vld [vmem:[%s2861_s27] sm:$0xff]  }
 0xbf9   : > { %v1714_v16 = vpop.f32.mrb[36].mxu0  ;;  %v2585_v15 = vld [vmem:[%s2861_s27 + $0x8] sm:$0xff]  }
 0xbfa   : > { %v2573_v17 = vpack.i.bf16 %v1714_v16, %v1666_v12  ;;  %v2477_v18 = vpop.f32.mrb[37].mxu0  ;;  %v2586_v16 = vld [vmem:[%s2861_s27 + $0x10] sm:$0xff]  }
 0xbfb   : > { %v1717_v19 = vpop.f32.mrb[38].mxu0  ;;  %v2588_v18 = vld [vmem:[%s2861_s27 + $0x20] sm:$0xff]  }
 0xbfc   : > { %2574 = vrot.lane.b32.xlu0 %v2573_v17, %s2709_s20  ;;  %v2478_v20 = vpop.f32.mrb[39].mxu0  ;;  %v2587_v17 = vld [vmem:[%s2861_s27 + $0x18] sm:$0xff]   ;;  %v2589_v19 = vld [vmem:[%s2861_s27 + $0x28] sm:$0xff]  }
 0xbfd   : > { %v2590_v20 = vld [vmem:[%s2861_s27 + $0x30] sm:$0xff]  }
 0xc6e   : > { %v2575_v27 = vpop.permute.xlu0 %2574 }
 0xc6f   : > { %v2577_v30 = vunpack.i.h.bf16 %v2575_v27  ;;  %v2576_v31 = vunpack.i.l.bf16 %v2575_v27 }
 0xc71   : > { %v1751_v35 = vsel %vm1749_vm6, %v1748_v34, %v2577_v30  ;;  %v1750_v36 = vsel %vm1749_vm6, %v1747_v32, %v2576_v31 }
 0xc72   : > { %v1752_v39 = vpack.c.bf16 %v1751_v35, %v1750_v36 }
 0xc74   : > { %2484 = vmatmul.mubr.msk.bf16.vlgmr.msra.gmra.mrb[28].mxu1 %vm715_vm1, %v1752_v39 }
 0xc75   : > { %2511 = vmatprep.mubr.msk.bf16.mxu1 %vm2695_vm2, %v2694_v25  ;;  %2496 = vmatpush3.bf16.msra.mxu1 %v2584_v14 }
 0xc76   : > { %2497 = vmatprep.subr.bf16.mxu1 %v2694_v25 }
 0xc79   : > { %2498 = vmatpush3.bf16.msra.mxu1 %v2585_v15 }
 0xc7a   : > { %2499 = vmatprep.subr.bf16.mxu1 %v2694_v25 }
 0xc7d   : > { %2500 = vmatpush3.bf16.msra.mxu1 %v2586_v16 }
 0xc7e   : > { %2501 = vmatprep.subr.bf16.mxu1 %v2694_v25 }
 0xc81   : > { %2502 = vmatpush3.bf16.msra.mxu1 %v2587_v17 }
 0xc82   : > { %2503 = vmatprep.subr.bf16.mxu1 %v2694_v25 }
 0xc85   : > { %2504 = vmatpush3.bf16.msra.mxu1 %v2588_v18 }
 0xc86   : > { %2505 = vmatprep.subr.bf16.mxu1 %v2694_v25 }
 0xc89   : > { %2506 = vmatpush3.bf16.msra.mxu1 %v2589_v19 }
 0xc8a   : > { %2507 = vmatprep.subr.bf16.mxu1 %v2694_v25 }
 0xc8d   : > { %2508 = vmatpush3.bf16.msra.mxu1 %v2590_v20 }
 0xc8e   : > { %2509 = vmatprep.subr.bf16.mxu1 %v2694_v25 }
 0xc91   : > { %2510 = vmatpush3.bf16.msra.mxu1 %v2591_v57 }
 0xd47   : > { %v1813_v40 = vpop.f32.mrb[28].mxu1 }
 0xd48   : > { %v1814_v42 = vadd.f32 %v2292_v45, %v1813_v40  ;;  %v2485_v41 = vpop.f32.mrb[29].mxu1 }
 0xd49   : > { %v1816_v43 = vpop.f32.mrb[30].mxu1 }
 0xd4a   : > { %v3088_v44 = vadd.f32 %v1814_v42, %v2876_v10  ;;  %v1817_v46 = vadd.f32 %v2292_v45, %v1816_v43  ;;  %v2486_v47 = vpop.f32.mrb[31].mxu1  ;;  %v2304_v43 = vld [vmem:[%s691_s16] ss:$0 sm:$0xff] }
 0xd4c   : > { %v3091_v48 = vadd.f32 %v1817_v46, %v2878_v11  ;;  %v1824_v50 = vsel %vm715_vm1, %v3088_v44, 0.0 }
 0xd4d   : > { %1825 = vadd.xlane.f32.xlu1 %v1824_v50 }
 0xd4e   : > { %v1827_v51 = vsel %vm715_vm1, %v3091_v48, 0.0 }
 0xd4f   : > { %1828 = vadd.xlane.f32.xlu0 %v1827_v51 }
 0xdda   : > { %v1826_v53 = vpop.xlane.xlu1 %1825 }
 0xddb   : > { %v1830_v61 = vmul.f32 0.03125, %v1826_v53 }
 0xddc   : > { %v1829_v54 = vpop.xlane.xlu0 %1828 }
 0xddd   : > { %v1832_v10 = vsub.f32 %v3088_v44, %v1830_v61  ;;  %v1831_v55 = vmul.f32 0.03125, %v1829_v54 }
 0xddf   : > { %v1833_v56 = vsub.f32 %v3091_v48, %v1831_v55  ;;  %v1834_v11 = vmul.f32 %v1832_v10, %v1832_v10 }
 0xde1   : > { %v1836_v58 = vsel %vm715_vm1, %v1834_v11, 0.0  ;;  %v1835_v59 = vmul.f32 %v1833_v56, %v1833_v56 }
 0xde2   : > { %1837 = vadd.xlane.f32.xlu0 %v1836_v58 }
 0xde3   : > { %v1839_v62 = vsel %vm715_vm1, %v1835_v59, 0.0 }
 0xde6   : > { %1840 = vadd.xlane.f32.xlu0 %v1839_v62 }
 0xe6f   : > { %v1838_v33 = vpop.xlane.xlu0 %1837 }
 0xe70   : > { %v1842_v37 = vmul.f32 0.03125, %v1838_v33 }
 0xe72   : > { %v1844_v38 = vadd.f32 1e-05, %v1842_v37 }
 0xe73   : > { %v1841_v0 = vpop.xlane.xlu0 %1840 }
 0xe74   : > { %2628 = vrsqrt.f32 %v1844_v38  ;;  %v1843_v1 = vmul.f32 0.03125, %v1841_v0 }
 0xe76   : > { %v1845_v2 = vadd.f32 1e-05, %v1843_v1 }
 0xe78   : > { %2630 = vrsqrt.f32 %v1845_v2 }
 0xe7e   : > { %v2629_v3 = vpop.eup %2628 }
 0xe7f   : > { %v1848_v4 = vmul.f32 %v2629_v3, %v1832_v10 }
 0xe81   : > { %v1856_v7 = vmul.f32 %v2296_v5, %v1848_v4 }
 0xe82   : > { %v2631_v6 = vpop.eup %2630 }
 0xe83   : > { %v1849_v60 = vmul.f32 %v2631_v6, %v1833_v56  ;;  %v1864_v9 = vadd.f32 %v2297_v49, %v1856_v7 }
 0xe85   : > { %v1857_v8 = vmul.f32 %v2296_v5, %v1849_v60 }
 0xe87   : > { %v1865_v12 = vadd.f32 %v2297_v49, %v1857_v8 }
 0xe89   : > { %v1866_v13 = vpack.c.bf16 %v1865_v12, %v1864_v9 }
 0xe8b   : > { %2492 = vmatmul.mubr.msk.bf16.vlgmr.msra.gmra.mrb[40].mxu0 %vm715_vm1, %v1866_v13 }
 0xf5e   : > { %v1927_v22 = vpop.f32.mrb[40].mxu0 }
 0xf5f   : > { %v1928_v23 = vadd.f32 %v2298_v21, %v1927_v22  ;;  %v2493_v24 = vpop.f32.mrb[41].mxu0 }
 0xf60   : > { %v1930_v26 = vpop.f32.mrb[42].mxu0 }
 0xf61   : > { %v2302_v27 = vmul.f32 -1.702, %v1928_v23  ;;  %v1931_v28 = vadd.f32 %v2298_v21, %v1930_v26  ;;  %v2494_v29 = vpop.f32.mrb[43].mxu0 }
 0xf63   : > { %v1938_v30 = vmul.f32 1.442695, %v2302_v27  ;;  %v2303_v31 = vmul.f32 -1.702, %v1931_v28 }
 0xf65   : > { %2632 = vpow2.f32 %v1938_v30  ;;  %v1940_v32 = vmul.f32 1.442695, %v2303_v31 }
 0xf67   : > { %2634 = vpow2.f32 %v1940_v32 }
 0xf6f   : > { %v2633_v25 = vpop.eup %2632 }
 0xf70   : > { %v1942_v34 = vadd.f32 1.0, %v2633_v25 }
 0xf71   : > { %v2635_v35 = vpop.eup %2634 }
 0xf72   : > { %2636 = vrcp.f32 %v1942_v34  ;;  %v1943_v36 = vadd.f32 1.0, %v2635_v35 }
 0xf74   : > { %2638 = vrcp.f32 %v1943_v36 }
 0xf7c   : > { %v2637_v39 = vpop.eup %2636 }
 0xf7d   : > { %v1948_v40 = vmul.f32 %v2637_v39, %v1928_v23 }
 0xf7e   : > { %v2639_v45 = vpop.eup %2638 }
 0xf7f   : > { %v1949_v42 = vmul.f32 %v2639_v45, %v1931_v28 }
 0xf81   : > { %v1950_v41 = vpack.c.bf16 %v1949_v42, %v1948_v40 }
 0xf83   : > { %2512 = vmatmul.mubr.bf16.vlgmr.msra.gmra.mrb[32].mxu1 %v1950_v41 }
0x1056   : > { %v2056_v46 = vpop.f32.mrb[32].mxu1 }
0x1057   : > { %v2057_v47 = vadd.f32 %v2304_v43, %v2056_v46  ;;  %v2513_v50 = vpop.f32.mrb[33].mxu1 }
0x1058   : > { %v2059_v51 = vpop.f32.mrb[34].mxu1 }
0x1059   : > { %v2063_v53 = vadd.f32 %v2057_v47, %v3088_v44  ;;  %v2060_v61 = vadd.f32 %v2304_v43, %v2059_v51  ;;  %v2514_v54 = vpop.f32.mrb[35].mxu1 }
0x105b   : > { %2065 = vst.msk [vmem:[#allocation2] sm:$0xff] %vm715_vm1, %v2063_v53  ;;  %v2064_v10 = vadd.f32 %v2060_v61, %v3091_v48 }
0x105d   : > { %2066 = vst.msk [vmem:[#allocation2 + $0x8] sm:$0xff] %vm715_vm1, %v2064_v10 }
0x105e   : > { %2653 = shalt.err (!%p2650_p13)
}
0x105f   : > { %s3224_s22 = sld [smem:[#allocation13_spill]] }
0x1065   : > { %s2654_s2 = scalar_lea.hbm %s3224_s22, 256 }
0x1066   : > { %p2655_p0 = scmp.ne.s32.totalorder %s3224_s22, %s2654_s2  ;;  %p2660_p3 = scmp.lt.u32.totalorder %s2654_s2, %s3224_s22 }
0x1068   : > { %p2656_p1 = pnand %p2655_p0, %p3143_p6 }
0x106a   : > { %p2657_p2 = pneg %p2656_p1 }
0x106c   : > { %p2662_p4 = pnand %p2660_p3, %p2657_p2 }
0x106e   : > { %2665 = shalt.err (!%p2662_p4)
}
0x106f   : > { %s2711_s17 = smov 128  }
0x1070   : > { %2516 = dma.vmem_to_hbm [thread:$0]  (%p3143_p6), %s2077_s25, 256, %s3224_s22, [#allocation3], %s2711_s17, %s2711_s17, %s2707_s15  }
0x1071   : > { %2679 = dma.done.wait (%p3143_p6), [#allocation3], 256  }
0x1072   : > { %2681 = vsyncadd (%p3143_p6), [#allocation3], 4294967040 }
0x1073 PF: > { %s3225_s7 = sld [smem:[#allocation6_spill]]  ;;  %s3226_s18 = sld [smem:[#allocation5_spill]] }
0x1074   : > { %s3227_s19 = sld [smem:[#allocation7_spill]] }
0x1079   : > { %s26_s20 = sadd.s32 1, %s3225_s7  }
0x107a   : > { %p23_p5 = scmp.ge.s32.totalorder %s26_s20, 4  }
0x107c   :  { %25 = sbr.rel (!%p23_p5) target bundleno = 8 (0x8), region = 148 }
0x1083   :  { %2092 = vsyncpa [#allocation3], 1 }
0x1084   :  { %2094 = vsyncpa [#allocation3 + $0x1], 1 }

</bundles_post_ra>
